<compile_context>
chip_gen: v7x
topology: tpu7x:2x2x1
jax: 0.10.0
libtpu: 0.0.40
codegen_flags: <defaults>
</compile_context>

<pallas_src>
from functools import partial

import jax
import jax.numpy as jnp
from jax.experimental import pallas as pl
from jax.experimental.pallas import tpu as pltpu


# ---------------------------------------------------------------------------
# helpers
# ---------------------------------------------------------------------------
def _round_up(x, m):
    return (x + m - 1) // m * m


def _vmem_limit(est_bytes, floor=32 * 1024 * 1024, cap=64 * 1024 * 1024):
    """Scoped-VMEM limit from an estimate (already incl. double buffering)."""
    return int(min(cap, max(floor, est_bytes * 3 // 2)))


def _pick_proj_chunk(T, Bp, max_rows=1024):
    """Largest time chunk Tb dividing T with Tb*Bp rows <= max_rows."""
    best = 1
    for tb in range(1, T + 1):
        if T % tb == 0 and tb * Bp <= max_rows:
            best = tb
    return best


def _pick_time_chunk(T, Bb, Hp, wbytes, max_tc=16, budget=24 * 1024 * 1024):
    """Largest recurrence time chunk (<= max_tc) whose buffers fit the budget."""
    best = 1
    for tc in range(1, min(T, max_tc) + 1):
        if T % tc != 0:
            continue
        need = 2 * 3 * tc * Bb * Hp * 4 + 2 * 3 * Hp * Hp * wbytes + 2 * Bb * Hp * 4
        if need <= budget:
            best = tc
    return best


def _sigmoid(x):
    # sigmoid(x) == 0.5 * (1 + tanh(x / 2)): a single EUP push per element
    # instead of exp + reciprocal on the serial recurrence critical path.
    return 0.5 * jnp.tanh(0.5 * x) + 0.5


# ---------------------------------------------------------------------------
# 1) Input-projection pre-pass:  (Tb*Bp, D) @ (D, 3Hp) + b,  split outputs
# ---------------------------------------------------------------------------
def _proj_kernel(x_ref, w_ref, b_ref, oz_ref, or_ref, oh_ref):
    Tb, Bp, D = x_ref.shape
    Hp = oz_ref.shape[-1]
    # Bp % 8 == 0, so this reshape is tile-aligned (free).
    x = x_ref[...].reshape(Tb * Bp, D).astype(w_ref.dtype)
    y = jnp.dot(x, w_ref[...], preferred_element_type=jnp.float32) + b_ref[...]
    # Hp % 128 == 0, so the lane-axis splits below are tile-aligned (free).
    oz_ref[...] = y[:, :Hp].reshape(Tb, Bp, Hp)
    or_ref[...] = y[:, Hp:2 * Hp].reshape(Tb, Bp, Hp)
    oh_ref[...] = y[:, 2 * Hp:].reshape(Tb, Bp, Hp)


def _input_projection(x_tm, w_all, b_all, Tb, Hp):
    # x_tm: (T, Bp, D) time-major;  w_all: (D, 3Hp);  b_all: (1, 3Hp)
    T, Bp, D = x_tm.shape
    H3 = w_all.shape[1]
    rows = Tb * Bp
    wbytes = jnp.dtype(w_all.dtype).itemsize
    # double-buffered input/output blocks + weights + matmul temporary
    est = (2 * (rows * D * 4 + D * H3 * wbytes + H3 * 4 + 3 * rows * Hp * 4)
           + rows * H3 * 4)
    # TODO: for very large D*3H (weights >~8 MiB) add an 'arbitrary' K axis
    # over D with an f32 accumulator (standard P3 tiling); unnecessary here.
    return pl.pallas_call(
        _proj_kernel,
        out_shape=tuple(jax.ShapeDtypeStruct((T, Bp, Hp), jnp.float32)
                        for _ in range(3)),
        grid_spec=pltpu.PrefetchScalarGridSpec(
            num_scalar_prefetch=0,
            grid=(T // Tb,),
            in_specs=[
                pl.BlockSpec((Tb, Bp, D), lambda g: (g, 0, 0)),
                pl.BlockSpec((D, H3), lambda g: (0, 0)),
                pl.BlockSpec((1, H3), lambda g: (0, 0)),
            ],
            out_specs=[pl.BlockSpec((Tb, Bp, Hp), lambda g: (g, 0, 0))] * 3,
        ),
        compiler_params=pltpu.CompilerParams(
            dimension_semantics=("parallel",),
            vmem_limit_bytes=_vmem_limit(est)),
    )(x_tm, w_all, b_all)


# ---------------------------------------------------------------------------
# 2) Recurrence: h resident in VMEM across time chunks, batch blocks parallel
# ---------------------------------------------------------------------------
def _gru_recurrence_kernel(xz_ref, xr_ref, xh_ref, uz_ref, ur_ref, uh_ref,
                           h_ref, *, unroll):
    g = pl.program_id(1)          # time-chunk index (serial / "arbitrary")
    Tc = xz_ref.shape[0]

    @pl.when(g == 0)
    def _():
        h_ref[...] = jnp.zeros_like(h_ref)

    uz = uz_ref[...]              # (Hp, Hp)  MXU dtype
    ur = ur_ref[...]
    uh = uh_ref[...]
    mxu = uz.dtype

    def step(tt, h):
        hc = h.astype(mxu)
        z = _sigmoid(xz_ref[tt]
                     + jnp.dot(hc, uz, preferred_element_type=jnp.float32))
        r = _sigmoid(xr_ref[tt]
                     + jnp.dot(hc, ur, preferred_element_type=jnp.float32))
        h_tilde = jnp.tanh(
            xh_ref[tt]
            + jnp.dot((r * h).astype(mxu), uh,
                      preferred_element_type=jnp.float32))
        return (1.0 - z) * h + z * h_tilde

    h_ref[...] = jax.lax.fori_loop(0, Tc, step, h_ref[...], unroll=unroll)


def _recurrence(xz, xr, xh, uz, ur, uh, Tc, Bb, unroll):
    T, Bp, Hp = xz.shape
    nb = Bp // Bb
    wbytes = jnp.dtype(uz.dtype).itemsize
    est = (2 * (3 * Tc * Bb * Hp * 4 + 3 * Hp * Hp * wbytes + Bb * Hp * 4)
           + 8 * Bb * Hp * 4)
    kernel = partial(_gru_recurrence_kernel, unroll=unroll)
    return pl.pallas_call(
        kernel,
        out_shape=jax.ShapeDtypeStruct((Bp, Hp), jnp.float32),
        grid_spec=pltpu.PrefetchScalarGridSpec(
            num_scalar_prefetch=0,
            grid=(nb, T // Tc),
            in_specs=[
                pl.BlockSpec((Tc, Bb, Hp), lambda b, g: (g, b, 0)),
                pl.BlockSpec((Tc, Bb, Hp), lambda b, g: (g, b, 0)),
                pl.BlockSpec((Tc, Bb, Hp), lambda b, g: (g, b, 0)),
                pl.BlockSpec((Hp, Hp), lambda b, g: (0, 0)),
                pl.BlockSpec((Hp, Hp), lambda b, g: (0, 0)),
                pl.BlockSpec((Hp, Hp), lambda b, g: (0, 0)),
            ],
            out_specs=pl.BlockSpec((Bb, Hp), lambda b, g: (b, 0)),  # resident h
        ),
        compiler_params=pltpu.CompilerParams(
            dimension_semantics=("parallel", "arbitrary"),
            vmem_limit_bytes=_vmem_limit(est)),
    )(xz, xr, xh, uz, ur, uh)


# ---------------------------------------------------------------------------
# wrapper
# ---------------------------------------------------------------------------
@partial(jax.jit, static_argnames=("mxu_dtype",))
def gru_forward(inputs_btd, params, mxu_dtype=jnp.bfloat16):
    """inputs_btd: (B, T, D) like the PyTorch module.  Returns final h (B, H).

    mxu_dtype: dtype of the MXU matmul operands (weights / x / h).  bf16 is
    the fast path on v6e/v7x; accumulation and all gate math stay f32.
    """
    B, T, D = inputs_btd.shape
    H = params["uh"].shape[0]
    Hp = _round_up(H, 128)          # lane-dense (unmasked vst, no relayout)
    Bp = _round_up(B, 8)            # sublane aligned
    wbytes = jnp.dtype(mxu_dtype).itemsize

    def pad2(a, r, c):
        return jnp.pad(a, ((0, r - a.shape[0]), (0, c - a.shape[1])))

    # Fused projection weight [Wz|Wr|Wh] and folded biases (both Linear biases
    # add in this module's gates).  Zero padding: padded U rows are zero, so
    # padded h lanes can never contaminate the real outputs.
    w_all = jnp.concatenate([pad2(params["wz"], D, Hp),
                             pad2(params["wr"], D, Hp),
                             pad2(params["wh"], D, Hp)], axis=1).astype(mxu_dtype)
    b_all = jnp.concatenate([pad2(params["bz"], 1, Hp),
                             pad2(params["br"], 1, Hp),
                             pad2(params["bh"], 1, Hp)], axis=1)        # f32
    uz = pad2(params["uz"], Hp, Hp).astype(mxu_dtype)
    ur = pad2(params["ur"], Hp, Hp).astype(mxu_dtype)
    uh = pad2(params["uh"], Hp, Hp).astype(mxu_dtype)

    x = inputs_btd
    if Bp != B:
        x = jnp.pad(x, ((0, Bp - B), (0, 0), (0, 0)))
    # Single host-side transpose of the smallest tensor to time-major; the
    # projection then emits split time-major activations with no further
    # host-side copies.
    x_tm = jnp.transpose(x, (1, 0, 2))                 # (T, Bp, D)

    # --- pre-pass: all input projections as one big matmul -----------------
    Tb = _pick_proj_chunk(T, Bp)                       # rows/block <= 1024
    xz, xr, xh = _input_projection(x_tm, w_all, b_all, Tb, Hp)

    # --- serial recurrence ---------------------------------------------------
    nb = 2 if (Bp % 16 == 0) else 1                    # v7x: 2 TCs over batch
    Bb = Bp // nb
    Tc = _pick_time_chunk(T, Bb, Hp, wbytes)           # amortize grid overhead
    unroll = Tc if Tc <= 8 else 4                      # cap unroll for big H
    h = _recurrence(xz, xr, xh, uz, ur, uh, Tc, Bb, unroll)
    return h[:B, :H]


# ---------------------------------------------------------------------------
# parameters + pure-JAX reference
# ---------------------------------------------------------------------------
def init_params(key, input_size, hidden_size):
    """Deterministic init mimicking nn.Linear's U(-1/sqrt(fan_in), +)."""
    ks = jax.random.split(key, 12)

    def lin(kw, kb, fan_in, fan_out):
        bound = 1.0 / jnp.sqrt(fan_in)
        w = jax.random.uniform(kw, (fan_in, fan_out), jnp.float32, -bound, bound)
        b = jax.random.uniform(kb, (1, fan_out), jnp.float32, -bound, bound)
        return w, b

    wz, bwz = lin(ks[0], ks[1], input_size, hidden_size)
    uz, buz = lin(ks[2], ks[3], hidden_size, hidden_size)
    wr, bwr = lin(ks[4], ks[5], input_size, hidden_size)
    ur, bur = lin(ks[6], ks[7], hidden_size, hidden_size)
    wh, bwh = lin(ks[8], ks[9], input_size, hidden_size)
    uh, buh = lin(ks[10], ks[11], hidden_size, hidden_size)
    return dict(
        wz=wz, uz=uz, wr=wr, ur=ur, wh=wh, uh=uh,
        # both Linear biases are added in this module's gates -> fold them
        bz=bwz + buz, br=bwr + bur, bh=bwh + buh,
    )


def gru_reference(inputs_btd, params):
    """Pure-JAX reference of the PyTorch forward (for verification)."""
    B, T, D = inputs_btd.shape
    H = params["uh"].shape[0]
    h = jnp.zeros((B, H), jnp.float32)
    for t in range(T):
        x = inputs_btd[:, t, :]
        z = jax.nn.sigmoid(x @ params["wz"] + h @ params["uz"] + params["bz"])
        r = jax.nn.sigmoid(x @ params["wr"] + h @ params["ur"] + params["br"])
        h_tilde = jnp.tanh(x @ params["wh"] + (r * h) @ params["uh"] + params["bh"])
        h = (1.0 - z) * h + z * h_tilde
    return h


if __name__ == "__main__":
    B, T, D_IN, H = 2, 8, 16, 32
    key = jax.random.PRNGKey(0)
    k_x, k_p = jax.random.split(key)
    inputs = jax.random.normal(k_x, (B, T, D_IN), jnp.float32)
    params = init_params(k_p, D_IN, H)

    ref = gru_reference(inputs, params)

    # f32 MXU path: tight check against the reference.
    out_f32 = jax.block_until_ready(gru_forward(inputs, params,
                                                mxu_dtype=jnp.float32))
    assert out_f32.shape == (B, H)
    assert jnp.allclose(out_f32, ref, atol=1e-5, rtol=1e-5), "f32 mismatch"

    # bf16 MXU path (v6e/v7x fast path): looser tolerance.
    out_bf16 = jax.block_until_ready(gru_forward(inputs, params,
                                                 mxu_dtype=jnp.bfloat16))
    assert out_bf16.shape == (B, H)
    assert jnp.allclose(out_bf16, ref, atol=5e-2, rtol=5e-2), "bf16 mismatch"

    print("KERNEL_OK")
</pallas_src>

<mosaic_0001>
module attributes {stable_mosaic.version = 11 : i64} {
  func.func @_proj_kernel(%arg0: i32, %arg1: memref<8x8x16xf32, #tpu.memory_space<vmem>>, %arg2: memref<16x384xf32, #tpu.memory_space<vmem>>, %arg3: memref<1x384xf32, #tpu.memory_space<vmem>>, %arg4: memref<8x8x128xf32, #tpu.memory_space<vmem>>, %arg5: memref<8x8x128xf32, #tpu.memory_space<vmem>>, %arg6: memref<8x8x128xf32, #tpu.memory_space<vmem>>) attributes {dimension_semantics = [#tpu.dimension_semantics<parallel>], iteration_bounds = array<i64: 1>, scalar_prefetch = 0 : i64, scratch_operands = 0 : i64, tpu.core_type = #tpu.core_type<tc>, window_params = [{transform_indices = @transform_0, window_bounds = array<i64: 8, 8, 16>}, {pipeline_mode = #tpu.pipeline_mode<synchronous>, transform_indices = @transform_1, window_bounds = array<i64: 16, 384>}, {pipeline_mode = #tpu.pipeline_mode<synchronous>, transform_indices = @transform_2, window_bounds = array<i64: 1, 384>}, {transform_indices = @transform_3, window_bounds = array<i64: 8, 8, 128>}, {transform_indices = @transform_4, window_bounds = array<i64: 8, 8, 128>}, {transform_indices = @transform_5, window_bounds = array<i64: 8, 8, 128>}]} {
    %c0 = arith.constant 0 : index
    %c0_0 = arith.constant 0 : index
    %c0_1 = arith.constant 0 : index
    %0 = vector.load %arg1[%c0, %c0_0, %c0_1] : memref<8x8x16xf32, #tpu.memory_space<vmem>>, vector<8x8x16xf32>
    %1 = vector.shape_cast %0 : vector<8x8x16xf32> to vector<64x16xf32>
    %c0_2 = arith.constant 0 : index
    %c0_3 = arith.constant 0 : index
    %2 = vector.load %arg2[%c0_2, %c0_3] : memref<16x384xf32, #tpu.memory_space<vmem>>, vector<16x384xf32>
    %cst = arith.constant dense<0.000000e+00> : vector<64x384xf32>
    %3 = tpu.matmul %1, %2, %cst {dimension_numbers = #tpu.dot_dimension_numbers<[1], [0], [0], [1], [0, 0, 1, 1], [], []>} : vector<64x16xf32>, vector<16x384xf32>, vector<64x384xf32> -> vector<64x384xf32>
    %c0_4 = arith.constant 0 : index
    %c0_5 = arith.constant 0 : index
    %4 = vector.load %arg3[%c0_4, %c0_5] : memref<1x384xf32, #tpu.memory_space<vmem>>, vector<1x384xf32>
    %5 = vector.broadcast %4 : vector<1x384xf32> to vector<64x384xf32>
    %6 = arith.addf %3, %5 : vector<64x384xf32>
    %7 = vector.extract_strided_slice %6 {offsets = [0, 0], sizes = [64, 128], strides = [1, 1]} : vector<64x384xf32> to vector<64x128xf32>
    %8 = vector.shape_cast %7 : vector<64x128xf32> to vector<8x8x128xf32>
    %c0_6 = arith.constant 0 : index
    %c0_7 = arith.constant 0 : index
    %c0_8 = arith.constant 0 : index
    %9 = vector.load %arg4[%c0_6, %c0_7, %c0_8] : memref<8x8x128xf32, #tpu.memory_space<vmem>>, vector<8x8x128xf32>
    tpu.vector_store %arg4[%c0_6, %c0_7, %c0_8], %8 {strides = array<i32>} : memref<8x8x128xf32, #tpu.memory_space<vmem>>, vector<8x8x128xf32>,
    %10 = vector.extract_strided_slice %6 {offsets = [0, 128], sizes = [64, 128], strides = [1, 1]} : vector<64x384xf32> to vector<64x128xf32>
    %11 = vector.shape_cast %10 : vector<64x128xf32> to vector<8x8x128xf32>
    %c0_9 = arith.constant 0 : index
    %c0_10 = arith.constant 0 : index
    %c0_11 = arith.constant 0 : index
    %12 = vector.load %arg5[%c0_9, %c0_10, %c0_11] : memref<8x8x128xf32, #tpu.memory_space<vmem>>, vector<8x8x128xf32>
    tpu.vector_store %arg5[%c0_9, %c0_10, %c0_11], %11 {strides = array<i32>} : memref<8x8x128xf32, #tpu.memory_space<vmem>>, vector<8x8x128xf32>,
    %13 = vector.extract_strided_slice %6 {offsets = [0, 256], sizes = [64, 128], strides = [1, 1]} : vector<64x384xf32> to vector<64x128xf32>
    %14 = vector.shape_cast %13 : vector<64x128xf32> to vector<8x8x128xf32>
    %c0_12 = arith.constant 0 : index
    %c0_13 = arith.constant 0 : index
    %c0_14 = arith.constant 0 : index
    %15 = vector.load %arg6[%c0_12, %c0_13, %c0_14] : memref<8x8x128xf32, #tpu.memory_space<vmem>>, vector<8x8x128xf32>
    tpu.vector_store %arg6[%c0_12, %c0_13, %c0_14], %14 {strides = array<i32>} : memref<8x8x128xf32, #tpu.memory_space<vmem>>, vector<8x8x128xf32>,
    return
  }
  func.func @transform_0(%arg0: i32) -> (i32, i32, i32) {
    %c0_i32 = arith.constant 0 : i32
    %c0_i32_0 = arith.constant 0 : i32
    %c0_i32_1 = arith.constant 0 : i32
    return %arg0, %c0_i32, %c0_i32_0 : i32, i32, i32
  }
  func.func @transform_1(%arg0: i32) -> (i32, i32) {
    %c0_i32 = arith.constant 0 : i32
    %c0_i32_0 = arith.constant 0 : i32
    %c0_i32_1 = arith.constant 0 : i32
    return %c0_i32, %c0_i32_0 : i32, i32
  }
  func.func @transform_2(%arg0: i32) -> (i32, i32) {
    %c0_i32 = arith.constant 0 : i32
    %c0_i32_0 = arith.constant 0 : i32
    %c0_i32_1 = arith.constant 0 : i32
    return %c0_i32, %c0_i32_0 : i32, i32
  }
  func.func @transform_3(%arg0: i32) -> (i32, i32, i32) {
    %c0_i32 = arith.constant 0 : i32
    %c0_i32_0 = arith.constant 0 : i32
    %c0_i32_1 = arith.constant 0 : i32
    return %arg0, %c0_i32, %c0_i32_0 : i32, i32, i32
  }
  func.func @transform_4(%arg0: i32) -> (i32, i32, i32) {
    %c0_i32 = arith.constant 0 : i32
    %c0_i32_0 = arith.constant 0 : i32
    %c0_i32_1 = arith.constant 0 : i32
    return %arg0, %c0_i32, %c0_i32_0 : i32, i32, i32
  }
  func.func @transform_5(%arg0: i32) -> (i32, i32, i32) {
    %c0_i32 = arith.constant 0 : i32
    %c0_i32_0 = arith.constant 0 : i32
    %c0_i32_1 = arith.constant 0 : i32
    return %arg0, %c0_i32, %c0_i32_0 : i32, i32, i32
  }
}

module attributes {stable_mosaic.version = 11 : i64} {
  func.func @_gru_recurrence_kernel(%arg0: i32, %arg1: i32, %arg2: memref<8x8x128xf32, #tpu.memory_space<vmem>>, %arg3: memref<8x8x128xf32, #tpu.memory_space<vmem>>, %arg4: memref<8x8x128xf32, #tpu.memory_space<vmem>>, %arg5: memref<128x128xf32, #tpu.memory_space<vmem>>, %arg6: memref<128x128xf32, #tpu.memory_space<vmem>>, %arg7: memref<128x128xf32, #tpu.memory_space<vmem>>, %arg8: memref<8x128xf32, #tpu.memory_space<vmem>>) attributes {dimension_semantics = [#tpu.dimension_semantics<parallel>, #tpu.dimension_semantics<arbitrary>], iteration_bounds = array<i64: 1, 1>, scalar_prefetch = 0 : i64, scratch_operands = 0 : i64, tpu.core_type = #tpu.core_type<tc>, window_params = [{transform_indices = @transform_0, window_bounds = array<i64: 8, 8, 128>}, {transform_indices = @transform_1, window_bounds = array<i64: 8, 8, 128>}, {transform_indices = @transform_2, window_bounds = array<i64: 8, 8, 128>}, {pipeline_mode = #tpu.pipeline_mode<synchronous>, transform_indices = @transform_3, window_bounds = array<i64: 128, 128>}, {pipeline_mode = #tpu.pipeline_mode<synchronous>, transform_indices = @transform_4, window_bounds = array<i64: 128, 128>}, {pipeline_mode = #tpu.pipeline_mode<synchronous>, transform_indices = @transform_5, window_bounds = array<i64: 128, 128>}, {transform_indices = @transform_6, window_bounds = array<i64: 8, 128>}]} {
    %c0_i32 = arith.constant 0 : i32
    %0 = arith.cmpi eq, %arg1, %c0_i32 : i32
    %1 = arith.extui %0 : i1 to i32
    %c0_i32_0 = arith.constant 0 : i32
    %2 = arith.cmpi ne, %1, %c0_i32_0 : i32
    scf.if %2 {
      %cst_138 = arith.constant 0.000000e+00 : f32
      %296 = vector.broadcast %cst_138 : f32 to vector<8x128xf32>
      %c0_139 = arith.constant 0 : index
      %c0_140 = arith.constant 0 : index
      %297 = vector.load %arg8[%c0_139, %c0_140] : memref<8x128xf32, #tpu.memory_space<vmem>>, vector<8x128xf32>
      tpu.vector_store %arg8[%c0_139, %c0_140], %296 {strides = array<i32>} : memref<8x128xf32, #tpu.memory_space<vmem>>, vector<8x128xf32>,
    } else {
    }
    %c0 = arith.constant 0 : index
    %c0_1 = arith.constant 0 : index
    %3 = vector.load %arg5[%c0, %c0_1] : memref<128x128xf32, #tpu.memory_space<vmem>>, vector<128x128xf32>
    %c0_2 = arith.constant 0 : index
    %c0_3 = arith.constant 0 : index
    %4 = vector.load %arg6[%c0_2, %c0_3] : memref<128x128xf32, #tpu.memory_space<vmem>>, vector<128x128xf32>
    %c0_4 = arith.constant 0 : index
    %c0_5 = arith.constant 0 : index
    %5 = vector.load %arg7[%c0_4, %c0_5] : memref<128x128xf32, #tpu.memory_space<vmem>>, vector<128x128xf32>
    %c0_6 = arith.constant 0 : index
    %c0_7 = arith.constant 0 : index
    %6 = vector.load %arg8[%c0_6, %c0_7] : memref<8x128xf32, #tpu.memory_space<vmem>>, vector<8x128xf32>
    %c0_i32_8 = arith.constant 0 : i32
    %7 = arith.index_cast %c0_i32_8 : i32 to index
    %c0_9 = arith.constant 0 : index
    %c0_10 = arith.constant 0 : index
    %8 = vector.load %arg2[%7, %c0_9, %c0_10] : memref<8x8x128xf32, #tpu.memory_space<vmem>>, vector<1x8x128xf32>
    %9 = vector.shape_cast %8 : vector<1x8x128xf32> to vector<8x128xf32>
    %cst = arith.constant dense<0.000000e+00> : vector<8x128xf32>
    %10 = tpu.matmul %6, %3, %cst {dimension_numbers = #tpu.dot_dimension_numbers<[1], [0], [0], [1], [0, 0, 1, 1], [], []>} : vector<8x128xf32>, vector<128x128xf32>, vector<8x128xf32> -> vector<8x128xf32>
    %11 = arith.addf %9, %10 : vector<8x128xf32>
    %cst_11 = arith.constant 5.000000e-01 : f32
    %12 = vector.broadcast %cst_11 : f32 to vector<8x128xf32>
    %13 = arith.mulf %12, %11 : vector<8x128xf32>
    %14 = math.tanh %13 : vector<8x128xf32>
    %cst_12 = arith.constant 5.000000e-01 : f32
    %15 = vector.broadcast %cst_12 : f32 to vector<8x128xf32>
    %16 = arith.mulf %15, %14 : vector<8x128xf32>
    %cst_13 = arith.constant 5.000000e-01 : f32
    %17 = vector.broadcast %cst_13 : f32 to vector<8x128xf32>
    %18 = arith.addf %16, %17 : vector<8x128xf32>
    %19 = arith.index_cast %c0_i32_8 : i32 to index
    %c0_14 = arith.constant 0 : index
    %c0_15 = arith.constant 0 : index
    %20 = vector.load %arg3[%19, %c0_14, %c0_15] : memref<8x8x128xf32, #tpu.memory_space<vmem>>, vector<1x8x128xf32>
    %21 = vector.shape_cast %20 : vector<1x8x128xf32> to vector<8x128xf32>
    %cst_16 = arith.constant dense<0.000000e+00> : vector<8x128xf32>
    %22 = tpu.matmul %6, %4, %cst_16 {dimension_numbers = #tpu.dot_dimension_numbers<[1], [0], [0], [1], [0, 0, 1, 1], [], []>} : vector<8x128xf32>, vector<128x128xf32>, vector<8x128xf32> -> vector<8x128xf32>
    %23 = arith.addf %21, %22 : vector<8x128xf32>
    %cst_17 = arith.constant 5.000000e-01 : f32
    %24 = vector.broadcast %cst_17 : f32 to vector<8x128xf32>
    %25 = arith.mulf %24, %23 : vector<8x128xf32>
    %26 = math.tanh %25 : vector<8x128xf32>
    %cst_18 = arith.constant 5.000000e-01 : f32
    %27 = vector.broadcast %cst_18 : f32 to vector<8x128xf32>
    %28 = arith.mulf %27, %26 : vector<8x128xf32>
    %cst_19 = arith.constant 5.000000e-01 : f32
    %29 = vector.broadcast %cst_19 : f32 to vector<8x128xf32>
    %30 = arith.addf %28, %29 : vector<8x128xf32>
    %31 = arith.index_cast %c0_i32_8 : i32 to index
    %c0_20 = arith.constant 0 : index
    %c0_21 = arith.constant 0 : index
    %32 = vector.load %arg4[%31, %c0_20, %c0_21] : memref<8x8x128xf32, #tpu.memory_space<vmem>>, vector<1x8x128xf32>
    %33 = vector.shape_cast %32 : vector<1x8x128xf32> to vector<8x128xf32>
    %34 = arith.mulf %30, %6 : vector<8x128xf32>
    %cst_22 = arith.constant dense<0.000000e+00> : vector<8x128xf32>
    %35 = tpu.matmul %34, %5, %cst_22 {dimension_numbers = #tpu.dot_dimension_numbers<[1], [0], [0], [1], [0, 0, 1, 1], [], []>} : vector<8x128xf32>, vector<128x128xf32>, vector<8x128xf32> -> vector<8x128xf32>
    %36 = arith.addf %33, %35 : vector<8x128xf32>
    %37 = math.tanh %36 : vector<8x128xf32>
    %cst_23 = arith.constant 1.000000e+00 : f32
    %38 = vector.broadcast %cst_23 : f32 to vector<8x128xf32>
    %39 = arith.subf %38, %18 : vector<8x128xf32>
    %40 = arith.mulf %39, %6 : vector<8x128xf32>
    %41 = arith.mulf %18, %37 : vector<8x128xf32>
    %42 = arith.addf %40, %41 : vector<8x128xf32>
    %c1_i32 = arith.constant 1 : i32
    %43 = arith.index_cast %c1_i32 : i32 to index
    %c0_24 = arith.constant 0 : index
    %c0_25 = arith.constant 0 : index
    %44 = vector.load %arg2[%43, %c0_24, %c0_25] : memref<8x8x128xf32, #tpu.memory_space<vmem>>, vector<1x8x128xf32>
    %45 = vector.shape_cast %44 : vector<1x8x128xf32> to vector<8x128xf32>
    %cst_26 = arith.constant dense<0.000000e+00> : vector<8x128xf32>
    %46 = tpu.matmul %42, %3, %cst_26 {dimension_numbers = #tpu.dot_dimension_numbers<[1], [0], [0], [1], [0, 0, 1, 1], [], []>} : vector<8x128xf32>, vector<128x128xf32>, vector<8x128xf32> -> vector<8x128xf32>
    %47 = arith.addf %45, %46 : vector<8x128xf32>
    %cst_27 = arith.constant 5.000000e-01 : f32
    %48 = vector.broadcast %cst_27 : f32 to vector<8x128xf32>
    %49 = arith.mulf %48, %47 : vector<8x128xf32>
    %50 = math.tanh %49 : vector<8x128xf32>
    %cst_28 = arith.constant 5.000000e-01 : f32
    %51 = vector.broadcast %cst_28 : f32 to vector<8x128xf32>
    %52 = arith.mulf %51, %50 : vector<8x128xf32>
    %cst_29 = arith.constant 5.000000e-01 : f32
    %53 = vector.broadcast %cst_29 : f32 to vector<8x128xf32>
    %54 = arith.addf %52, %53 : vector<8x128xf32>
    %55 = arith.index_cast %c1_i32 : i32 to index
    %c0_30 = arith.constant 0 : index
    %c0_31 = arith.constant 0 : index
    %56 = vector.load %arg3[%55, %c0_30, %c0_31] : memref<8x8x128xf32, #tpu.memory_space<vmem>>, vector<1x8x128xf32>
    %57 = vector.shape_cast %56 : vector<1x8x128xf32> to vector<8x128xf32>
    %cst_32 = arith.constant dense<0.000000e+00> : vector<8x128xf32>
    %58 = tpu.matmul %42, %4, %cst_32 {dimension_numbers = #tpu.dot_dimension_numbers<[1], [0], [0], [1], [0, 0, 1, 1], [], []>} : vector<8x128xf32>, vector<128x128xf32>, vector<8x128xf32> -> vector<8x128xf32>
    %59 = arith.addf %57, %58 : vector<8x128xf32>
    %cst_33 = arith.constant 5.000000e-01 : f32
    %60 = vector.broadcast %cst_33 : f32 to vector<8x128xf32>
    %61 = arith.mulf %60, %59 : vector<8x128xf32>
    %62 = math.tanh %61 : vector<8x128xf32>
    %cst_34 = arith.constant 5.000000e-01 : f32
    %63 = vector.broadcast %cst_34 : f32 to vector<8x128xf32>
    %64 = arith.mulf %63, %62 : vector<8x128xf32>
    %cst_35 = arith.constant 5.000000e-01 : f32
    %65 = vector.broadcast %cst_35 : f32 to vector<8x128xf32>
    %66 = arith.addf %64, %65 : vector<8x128xf32>
    %67 = arith.index_cast %c1_i32 : i32 to index
    %c0_36 = arith.constant 0 : index
    %c0_37 = arith.constant 0 : index
    %68 = vector.load %arg4[%67, %c0_36, %c0_37] : memref<8x8x128xf32, #tpu.memory_space<vmem>>, vector<1x8x128xf32>
    %69 = vector.shape_cast %68 : vector<1x8x128xf32> to vector<8x128xf32>
    %70 = arith.mulf %66, %42 : vector<8x128xf32>
    %cst_38 = arith.constant dense<0.000000e+00> : vector<8x128xf32>
    %71 = tpu.matmul %70, %5, %cst_38 {dimension_numbers = #tpu.dot_dimension_numbers<[1], [0], [0], [1], [0, 0, 1, 1], [], []>} : vector<8x128xf32>, vector<128x128xf32>, vector<8x128xf32> -> vector<8x128xf32>
    %72 = arith.addf %69, %71 : vector<8x128xf32>
    %73 = math.tanh %72 : vector<8x128xf32>
    %cst_39 = arith.constant 1.000000e+00 : f32
    %74 = vector.broadcast %cst_39 : f32 to vector<8x128xf32>
    %75 = arith.subf %74, %54 : vector<8x128xf32>
    %76 = arith.mulf %75, %42 : vector<8x128xf32>
    %77 = arith.mulf %54, %73 : vector<8x128xf32>
    %78 = arith.addf %76, %77 : vector<8x128xf32>
    %c2_i32 = arith.constant 2 : i32
    %79 = arith.index_cast %c2_i32 : i32 to index
    %c0_40 = arith.constant 0 : index
    %c0_41 = arith.constant 0 : index
    %80 = vector.load %arg2[%79, %c0_40, %c0_41] : memref<8x8x128xf32, #tpu.memory_space<vmem>>, vector<1x8x128xf32>
    %81 = vector.shape_cast %80 : vector<1x8x128xf32> to vector<8x128xf32>
    %cst_42 = arith.constant dense<0.000000e+00> : vector<8x128xf32>
    %82 = tpu.matmul %78, %3, %cst_42 {dimension_numbers = #tpu.dot_dimension_numbers<[1], [0], [0], [1], [0, 0, 1, 1], [], []>} : vector<8x128xf32>, vector<128x128xf32>, vector<8x128xf32> -> vector<8x128xf32>
    %83 = arith.addf %81, %82 : vector<8x128xf32>
    %cst_43 = arith.constant 5.000000e-01 : f32
    %84 = vector.broadcast %cst_43 : f32 to vector<8x128xf32>
    %85 = arith.mulf %84, %83 : vector<8x128xf32>
    %86 = math.tanh %85 : vector<8x128xf32>
    %cst_44 = arith.constant 5.000000e-01 : f32
    %87 = vector.broadcast %cst_44 : f32 to vector<8x128xf32>
    %88 = arith.mulf %87, %86 : vector<8x128xf32>
    %cst_45 = arith.constant 5.000000e-01 : f32
    %89 = vector.broadcast %cst_45 : f32 to vector<8x128xf32>
    %90 = arith.addf %88, %89 : vector<8x128xf32>
    %91 = arith.index_cast %c2_i32 : i32 to index
    %c0_46 = arith.constant 0 : index
    %c0_47 = arith.constant 0 : index
    %92 = vector.load %arg3[%91, %c0_46, %c0_47] : memref<8x8x128xf32, #tpu.memory_space<vmem>>, vector<1x8x128xf32>
    %93 = vector.shape_cast %92 : vector<1x8x128xf32> to vector<8x128xf32>
    %cst_48 = arith.constant dense<0.000000e+00> : vector<8x128xf32>
    %94 = tpu.matmul %78, %4, %cst_48 {dimension_numbers = #tpu.dot_dimension_numbers<[1], [0], [0], [1], [0, 0, 1, 1], [], []>} : vector<8x128xf32>, vector<128x128xf32>, vector<8x128xf32> -> vector<8x128xf32>
    %95 = arith.addf %93, %94 : vector<8x128xf32>
    %cst_49 = arith.constant 5.000000e-01 : f32
    %96 = vector.broadcast %cst_49 : f32 to vector<8x128xf32>
    %97 = arith.mulf %96, %95 : vector<8x128xf32>
    %98 = math.tanh %97 : vector<8x128xf32>
    %cst_50 = arith.constant 5.000000e-01 : f32
    %99 = vector.broadcast %cst_50 : f32 to vector<8x128xf32>
    %100 = arith.mulf %99, %98 : vector<8x128xf32>
    %cst_51 = arith.constant 5.000000e-01 : f32
    %101 = vector.broadcast %cst_51 : f32 to vector<8x128xf32>
    %102 = arith.addf %100, %101 : vector<8x128xf32>
    %103 = arith.index_cast %c2_i32 : i32 to index
    %c0_52 = arith.constant 0 : index
    %c0_53 = arith.constant 0 : index
    %104 = vector.load %arg4[%103, %c0_52, %c0_53] : memref<8x8x128xf32, #tpu.memory_space<vmem>>, vector<1x8x128xf32>
    %105 = vector.shape_cast %104 : vector<1x8x128xf32> to vector<8x128xf32>
    %106 = arith.mulf %102, %78 : vector<8x128xf32>
    %cst_54 = arith.constant dense<0.000000e+00> : vector<8x128xf32>
    %107 = tpu.matmul %106, %5, %cst_54 {dimension_numbers = #tpu.dot_dimension_numbers<[1], [0], [0], [1], [0, 0, 1, 1], [], []>} : vector<8x128xf32>, vector<128x128xf32>, vector<8x128xf32> -> vector<8x128xf32>
    %108 = arith.addf %105, %107 : vector<8x128xf32>
    %109 = math.tanh %108 : vector<8x128xf32>
    %cst_55 = arith.constant 1.000000e+00 : f32
    %110 = vector.broadcast %cst_55 : f32 to vector<8x128xf32>
    %111 = arith.subf %110, %90 : vector<8x128xf32>
    %112 = arith.mulf %111, %78 : vector<8x128xf32>
    %113 = arith.mulf %90, %109 : vector<8x128xf32>
    %114 = arith.addf %112, %113 : vector<8x128xf32>
    %c3_i32 = arith.constant 3 : i32
    %115 = arith.index_cast %c3_i32 : i32 to index
    %c0_56 = arith.constant 0 : index
    %c0_57 = arith.constant 0 : index
    %116 = vector.load %arg2[%115, %c0_56, %c0_57] : memref<8x8x128xf32, #tpu.memory_space<vmem>>, vector<1x8x128xf32>
    %117 = vector.shape_cast %116 : vector<1x8x128xf32> to vector<8x128xf32>
    %cst_58 = arith.constant dense<0.000000e+00> : vector<8x128xf32>
    %118 = tpu.matmul %114, %3, %cst_58 {dimension_numbers = #tpu.dot_dimension_numbers<[1], [0], [0], [1], [0, 0, 1, 1], [], []>} : vector<8x128xf32>, vector<128x128xf32>, vector<8x128xf32> -> vector<8x128xf32>
    %119 = arith.addf %117, %118 : vector<8x128xf32>
    %cst_59 = arith.constant 5.000000e-01 : f32
    %120 = vector.broadcast %cst_59 : f32 to vector<8x128xf32>
    %121 = arith.mulf %120, %119 : vector<8x128xf32>
    %122 = math.tanh %121 : vector<8x128xf32>
    %cst_60 = arith.constant 5.000000e-01 : f32
    %123 = vector.broadcast %cst_60 : f32 to vector<8x128xf32>
    %124 = arith.mulf %123, %122 : vector<8x128xf32>
    %cst_61 = arith.constant 5.000000e-01 : f32
    %125 = vector.broadcast %cst_61 : f32 to vector<8x128xf32>
    %126 = arith.addf %124, %125 : vector<8x128xf32>
    %127 = arith.index_cast %c3_i32 : i32 to index
    %c0_62 = arith.constant 0 : index
    %c0_63 = arith.constant 0 : index
    %128 = vector.load %arg3[%127, %c0_62, %c0_63] : memref<8x8x128xf32, #tpu.memory_space<vmem>>, vector<1x8x128xf32>
    %129 = vector.shape_cast %128 : vector<1x8x128xf32> to vector<8x128xf32>
    %cst_64 = arith.constant dense<0.000000e+00> : vector<8x128xf32>
    %130 = tpu.matmul %114, %4, %cst_64 {dimension_numbers = #tpu.dot_dimension_numbers<[1], [0], [0], [1], [0, 0, 1, 1], [], []>} : vector<8x128xf32>, vector<128x128xf32>, vector<8x128xf32> -> vector<8x128xf32>
    %131 = arith.addf %129, %130 : vector<8x128xf32>
    %cst_65 = arith.constant 5.000000e-01 : f32
    %132 = vector.broadcast %cst_65 : f32 to vector<8x128xf32>
    %133 = arith.mulf %132, %131 : vector<8x128xf32>
    %134 = math.tanh %133 : vector<8x128xf32>
    %cst_66 = arith.constant 5.000000e-01 : f32
    %135 = vector.broadcast %cst_66 : f32 to vector<8x128xf32>
    %136 = arith.mulf %135, %134 : vector<8x128xf32>
    %cst_67 = arith.constant 5.000000e-01 : f32
    %137 = vector.broadcast %cst_67 : f32 to vector<8x128xf32>
    %138 = arith.addf %136, %137 : vector<8x128xf32>
    %139 = arith.index_cast %c3_i32 : i32 to index
    %c0_68 = arith.constant 0 : index
    %c0_69 = arith.constant 0 : index
    %140 = vector.load %arg4[%139, %c0_68, %c0_69] : memref<8x8x128xf32, #tpu.memory_space<vmem>>, vector<1x8x128xf32>
    %141 = vector.shape_cast %140 : vector<1x8x128xf32> to vector<8x128xf32>
    %142 = arith.mulf %138, %114 : vector<8x128xf32>
    %cst_70 = arith.constant dense<0.000000e+00> : vector<8x128xf32>
    %143 = tpu.matmul %142, %5, %cst_70 {dimension_numbers = #tpu.dot_dimension_numbers<[1], [0], [0], [1], [0, 0, 1, 1], [], []>} : vector<8x128xf32>, vector<128x128xf32>, vector<8x128xf32> -> vector<8x128xf32>
    %144 = arith.addf %141, %143 : vector<8x128xf32>
    %145 = math.tanh %144 : vector<8x128xf32>
    %cst_71 = arith.constant 1.000000e+00 : f32
    %146 = vector.broadcast %cst_71 : f32 to vector<8x128xf32>
    %147 = arith.subf %146, %126 : vector<8x128xf32>
    %148 = arith.mulf %147, %114 : vector<8x128xf32>
    %149 = arith.mulf %126, %145 : vector<8x128xf32>
    %150 = arith.addf %148, %149 : vector<8x128xf32>
    %c4_i32 = arith.constant 4 : i32
    %151 = arith.index_cast %c4_i32 : i32 to index
    %c0_72 = arith.constant 0 : index
    %c0_73 = arith.constant 0 : index
    %152 = vector.load %arg2[%151, %c0_72, %c0_73] : memref<8x8x128xf32, #tpu.memory_space<vmem>>, vector<1x8x128xf32>
    %153 = vector.shape_cast %152 : vector<1x8x128xf32> to vector<8x128xf32>
    %cst_74 = arith.constant dense<0.000000e+00> : vector<8x128xf32>
    %154 = tpu.matmul %150, %3, %cst_74 {dimension_numbers = #tpu.dot_dimension_numbers<[1], [0], [0], [1], [0, 0, 1, 1], [], []>} : vector<8x128xf32>, vector<128x128xf32>, vector<8x128xf32> -> vector<8x128xf32>
    %155 = arith.addf %153, %154 : vector<8x128xf32>
    %cst_75 = arith.constant 5.000000e-01 : f32
    %156 = vector.broadcast %cst_75 : f32 to vector<8x128xf32>
    %157 = arith.mulf %156, %155 : vector<8x128xf32>
    %158 = math.tanh %157 : vector<8x128xf32>
    %cst_76 = arith.constant 5.000000e-01 : f32
    %159 = vector.broadcast %cst_76 : f32 to vector<8x128xf32>
    %160 = arith.mulf %159, %158 : vector<8x128xf32>
    %cst_77 = arith.constant 5.000000e-01 : f32
    %161 = vector.broadcast %cst_77 : f32 to vector<8x128xf32>
    %162 = arith.addf %160, %161 : vector<8x128xf32>
    %163 = arith.index_cast %c4_i32 : i32 to index
    %c0_78 = arith.constant 0 : index
    %c0_79 = arith.constant 0 : index
    %164 = vector.load %arg3[%163, %c0_78, %c0_79] : memref<8x8x128xf32, #tpu.memory_space<vmem>>, vector<1x8x128xf32>
    %165 = vector.shape_cast %164 : vector<1x8x128xf32> to vector<8x128xf32>
    %cst_80 = arith.constant dense<0.000000e+00> : vector<8x128xf32>
    %166 = tpu.matmul %150, %4, %cst_80 {dimension_numbers = #tpu.dot_dimension_numbers<[1], [0], [0], [1], [0, 0, 1, 1], [], []>} : vector<8x128xf32>, vector<128x128xf32>, vector<8x128xf32> -> vector<8x128xf32>
    %167 = arith.addf %165, %166 : vector<8x128xf32>
    %cst_81 = arith.constant 5.000000e-01 : f32
    %168 = vector.broadcast %cst_81 : f32 to vector<8x128xf32>
    %169 = arith.mulf %168, %167 : vector<8x128xf32>
    %170 = math.tanh %169 : vector<8x128xf32>
    %cst_82 = arith.constant 5.000000e-01 : f32
    %171 = vector.broadcast %cst_82 : f32 to vector<8x128xf32>
    %172 = arith.mulf %171, %170 : vector<8x128xf32>
    %cst_83 = arith.constant 5.000000e-01 : f32
    %173 = vector.broadcast %cst_83 : f32 to vector<8x128xf32>
    %174 = arith.addf %172, %173 : vector<8x128xf32>
    %175 = arith.index_cast %c4_i32 : i32 to index
    %c0_84 = arith.constant 0 : index
    %c0_85 = arith.constant 0 : index
    %176 = vector.load %arg4[%175, %c0_84, %c0_85] : memref<8x8x128xf32, #tpu.memory_space<vmem>>, vector<1x8x128xf32>
    %177 = vector.shape_cast %176 : vector<1x8x128xf32> to vector<8x128xf32>
    %178 = arith.mulf %174, %150 : vector<8x128xf32>
    %cst_86 = arith.constant dense<0.000000e+00> : vector<8x128xf32>
    %179 = tpu.matmul %178, %5, %cst_86 {dimension_numbers = #tpu.dot_dimension_numbers<[1], [0], [0], [1], [0, 0, 1, 1], [], []>} : vector<8x128xf32>, vector<128x128xf32>, vector<8x128xf32> -> vector<8x128xf32>
    %180 = arith.addf %177, %179 : vector<8x128xf32>
    %181 = math.tanh %180 : vector<8x128xf32>
    %cst_87 = arith.constant 1.000000e+00 : f32
    %182 = vector.broadcast %cst_87 : f32 to vector<8x128xf32>
    %183 = arith.subf %182, %162 : vector<8x128xf32>
    %184 = arith.mulf %183, %150 : vector<8x128xf32>
    %185 = arith.mulf %162, %181 : vector<8x128xf32>
    %186 = arith.addf %184, %185 : vector<8x128xf32>
    %c5_i32 = arith.constant 5 : i32
    %187 = arith.index_cast %c5_i32 : i32 to index
    %c0_88 = arith.constant 0 : index
    %c0_89 = arith.constant 0 : index
    %188 = vector.load %arg2[%187, %c0_88, %c0_89] : memref<8x8x128xf32, #tpu.memory_space<vmem>>, vector<1x8x128xf32>
    %189 = vector.shape_cast %188 : vector<1x8x128xf32> to vector<8x128xf32>
    %cst_90 = arith.constant dense<0.000000e+00> : vector<8x128xf32>
    %190 = tpu.matmul %186, %3, %cst_90 {dimension_numbers = #tpu.dot_dimension_numbers<[1], [0], [0], [1], [0, 0, 1, 1], [], []>} : vector<8x128xf32>, vector<128x128xf32>, vector<8x128xf32> -> vector<8x128xf32>
    %191 = arith.addf %189, %190 : vector<8x128xf32>
    %cst_91 = arith.constant 5.000000e-01 : f32
    %192 = vector.broadcast %cst_91 : f32 to vector<8x128xf32>
    %193 = arith.mulf %192, %191 : vector<8x128xf32>
    %194 = math.tanh %193 : vector<8x128xf32>
    %cst_92 = arith.constant 5.000000e-01 : f32
    %195 = vector.broadcast %cst_92 : f32 to vector<8x128xf32>
    %196 = arith.mulf %195, %194 : vector<8x128xf32>
    %cst_93 = arith.constant 5.000000e-01 : f32
    %197 = vector.broadcast %cst_93 : f32 to vector<8x128xf32>
    %198 = arith.addf %196, %197 : vector<8x128xf32>
    %199 = arith.index_cast %c5_i32 : i32 to index
    %c0_94 = arith.constant 0 : index
    %c0_95 = arith.constant 0 : index
    %200 = vector.load %arg3[%199, %c0_94, %c0_95] : memref<8x8x128xf32, #tpu.memory_space<vmem>>, vector<1x8x128xf32>
    %201 = vector.shape_cast %200 : vector<1x8x128xf32> to vector<8x128xf32>
    %cst_96 = arith.constant dense<0.000000e+00> : vector<8x128xf32>
    %202 = tpu.matmul %186, %4, %cst_96 {dimension_numbers = #tpu.dot_dimension_numbers<[1], [0], [0], [1], [0, 0, 1, 1], [], []>} : vector<8x128xf32>, vector<128x128xf32>, vector<8x128xf32> -> vector<8x128xf32>
    %203 = arith.addf %201, %202 : vector<8x128xf32>
    %cst_97 = arith.constant 5.000000e-01 : f32
    %204 = vector.broadcast %cst_97 : f32 to vector<8x128xf32>
    %205 = arith.mulf %204, %203 : vector<8x128xf32>
    %206 = math.tanh %205 : vector<8x128xf32>
    %cst_98 = arith.constant 5.000000e-01 : f32
    %207 = vector.broadcast %cst_98 : f32 to vector<8x128xf32>
    %208 = arith.mulf %207, %206 : vector<8x128xf32>
    %cst_99 = arith.constant 5.000000e-01 : f32
    %209 = vector.broadcast %cst_99 : f32 to vector<8x128xf32>
    %210 = arith.addf %208, %209 : vector<8x128xf32>
    %211 = arith.index_cast %c5_i32 : i32 to index
    %c0_100 = arith.constant 0 : index
    %c0_101 = arith.constant 0 : index
    %212 = vector.load %arg4[%211, %c0_100, %c0_101] : memref<8x8x128xf32, #tpu.memory_space<vmem>>, vector<1x8x128xf32>
    %213 = vector.shape_cast %212 : vector<1x8x128xf32> to vector<8x128xf32>
    %214 = arith.mulf %210, %186 : vector<8x128xf32>
    %cst_102 = arith.constant dense<0.000000e+00> : vector<8x128xf32>
    %215 = tpu.matmul %214, %5, %cst_102 {dimension_numbers = #tpu.dot_dimension_numbers<[1], [0], [0], [1], [0, 0, 1, 1], [], []>} : vector<8x128xf32>, vector<128x128xf32>, vector<8x128xf32> -> vector<8x128xf32>
    %216 = arith.addf %213, %215 : vector<8x128xf32>
    %217 = math.tanh %216 : vector<8x128xf32>
    %cst_103 = arith.constant 1.000000e+00 : f32
    %218 = vector.broadcast %cst_103 : f32 to vector<8x128xf32>
    %219 = arith.subf %218, %198 : vector<8x128xf32>
    %220 = arith.mulf %219, %186 : vector<8x128xf32>
    %221 = arith.mulf %198, %217 : vector<8x128xf32>
    %222 = arith.addf %220, %221 : vector<8x128xf32>
    %c6_i32 = arith.constant 6 : i32
    %223 = arith.index_cast %c6_i32 : i32 to index
    %c0_104 = arith.constant 0 : index
    %c0_105 = arith.constant 0 : index
    %224 = vector.load %arg2[%223, %c0_104, %c0_105] : memref<8x8x128xf32, #tpu.memory_space<vmem>>, vector<1x8x128xf32>
    %225 = vector.shape_cast %224 : vector<1x8x128xf32> to vector<8x128xf32>
    %cst_106 = arith.constant dense<0.000000e+00> : vector<8x128xf32>
    %226 = tpu.matmul %222, %3, %cst_106 {dimension_numbers = #tpu.dot_dimension_numbers<[1], [0], [0], [1], [0, 0, 1, 1], [], []>} : vector<8x128xf32>, vector<128x128xf32>, vector<8x128xf32> -> vector<8x128xf32>
    %227 = arith.addf %225, %226 : vector<8x128xf32>
    %cst_107 = arith.constant 5.000000e-01 : f32
    %228 = vector.broadcast %cst_107 : f32 to vector<8x128xf32>
    %229 = arith.mulf %228, %227 : vector<8x128xf32>
    %230 = math.tanh %229 : vector<8x128xf32>
    %cst_108 = arith.constant 5.000000e-01 : f32
    %231 = vector.broadcast %cst_108 : f32 to vector<8x128xf32>
    %232 = arith.mulf %231, %230 : vector<8x128xf32>
    %cst_109 = arith.constant 5.000000e-01 : f32
    %233 = vector.broadcast %cst_109 : f32 to vector<8x128xf32>
    %234 = arith.addf %232, %233 : vector<8x128xf32>
    %235 = arith.index_cast %c6_i32 : i32 to index
    %c0_110 = arith.constant 0 : index
    %c0_111 = arith.constant 0 : index
    %236 = vector.load %arg3[%235, %c0_110, %c0_111] : memref<8x8x128xf32, #tpu.memory_space<vmem>>, vector<1x8x128xf32>
    %237 = vector.shape_cast %236 : vector<1x8x128xf32> to vector<8x128xf32>
    %cst_112 = arith.constant dense<0.000000e+00> : vector<8x128xf32>
    %238 = tpu.matmul %222, %4, %cst_112 {dimension_numbers = #tpu.dot_dimension_numbers<[1], [0], [0], [1], [0, 0, 1, 1], [], []>} : vector<8x128xf32>, vector<128x128xf32>, vector<8x128xf32> -> vector<8x128xf32>
    %239 = arith.addf %237, %238 : vector<8x128xf32>
    %cst_113 = arith.constant 5.000000e-01 : f32
    %240 = vector.broadcast %cst_113 : f32 to vector<8x128xf32>
    %241 = arith.mulf %240, %239 : vector<8x128xf32>
    %242 = math.tanh %241 : vector<8x128xf32>
    %cst_114 = arith.constant 5.000000e-01 : f32
    %243 = vector.broadcast %cst_114 : f32 to vector<8x128xf32>
    %244 = arith.mulf %243, %242 : vector<8x128xf32>
    %cst_115 = arith.constant 5.000000e-01 : f32
    %245 = vector.broadcast %cst_115 : f32 to vector<8x128xf32>
    %246 = arith.addf %244, %245 : vector<8x128xf32>
    %247 = arith.index_cast %c6_i32 : i32 to index
    %c0_116 = arith.constant 0 : index
    %c0_117 = arith.constant 0 : index
    %248 = vector.load %arg4[%247, %c0_116, %c0_117] : memref<8x8x128xf32, #tpu.memory_space<vmem>>, vector<1x8x128xf32>
    %249 = vector.shape_cast %248 : vector<1x8x128xf32> to vector<8x128xf32>
    %250 = arith.mulf %246, %222 : vector<8x128xf32>
    %cst_118 = arith.constant dense<0.000000e+00> : vector<8x128xf32>
    %251 = tpu.matmul %250, %5, %cst_118 {dimension_numbers = #tpu.dot_dimension_numbers<[1], [0], [0], [1], [0, 0, 1, 1], [], []>} : vector<8x128xf32>, vector<128x128xf32>, vector<8x128xf32> -> vector<8x128xf32>
    %252 = arith.addf %249, %251 : vector<8x128xf32>
    %253 = math.tanh %252 : vector<8x128xf32>
    %cst_119 = arith.constant 1.000000e+00 : f32
    %254 = vector.broadcast %cst_119 : f32 to vector<8x128xf32>
    %255 = arith.subf %254, %234 : vector<8x128xf32>
    %256 = arith.mulf %255, %222 : vector<8x128xf32>
    %257 = arith.mulf %234, %253 : vector<8x128xf32>
    %258 = arith.addf %256, %257 : vector<8x128xf32>
    %c7_i32 = arith.constant 7 : i32
    %259 = arith.index_cast %c7_i32 : i32 to index
    %c0_120 = arith.constant 0 : index
    %c0_121 = arith.constant 0 : index
    %260 = vector.load %arg2[%259, %c0_120, %c0_121] : memref<8x8x128xf32, #tpu.memory_space<vmem>>, vector<1x8x128xf32>
    %261 = vector.shape_cast %260 : vector<1x8x128xf32> to vector<8x128xf32>
    %cst_122 = arith.constant dense<0.000000e+00> : vector<8x128xf32>
    %262 = tpu.matmul %258, %3, %cst_122 {dimension_numbers = #tpu.dot_dimension_numbers<[1], [0], [0], [1], [0, 0, 1, 1], [], []>} : vector<8x128xf32>, vector<128x128xf32>, vector<8x128xf32> -> vector<8x128xf32>
    %263 = arith.addf %261, %262 : vector<8x128xf32>
    %cst_123 = arith.constant 5.000000e-01 : f32
    %264 = vector.broadcast %cst_123 : f32 to vector<8x128xf32>
    %265 = arith.mulf %264, %263 : vector<8x128xf32>
    %266 = math.tanh %265 : vector<8x128xf32>
    %cst_124 = arith.constant 5.000000e-01 : f32
    %267 = vector.broadcast %cst_124 : f32 to vector<8x128xf32>
    %268 = arith.mulf %267, %266 : vector<8x128xf32>
    %cst_125 = arith.constant 5.000000e-01 : f32
    %269 = vector.broadcast %cst_125 : f32 to vector<8x128xf32>
    %270 = arith.addf %268, %269 : vector<8x128xf32>
    %271 = arith.index_cast %c7_i32 : i32 to index
    %c0_126 = arith.constant 0 : index
    %c0_127 = arith.constant 0 : index
    %272 = vector.load %arg3[%271, %c0_126, %c0_127] : memref<8x8x128xf32, #tpu.memory_space<vmem>>, vector<1x8x128xf32>
    %273 = vector.shape_cast %272 : vector<1x8x128xf32> to vector<8x128xf32>
    %cst_128 = arith.constant dense<0.000000e+00> : vector<8x128xf32>
    %274 = tpu.matmul %258, %4, %cst_128 {dimension_numbers = #tpu.dot_dimension_numbers<[1], [0], [0], [1], [0, 0, 1, 1], [], []>} : vector<8x128xf32>, vector<128x128xf32>, vector<8x128xf32> -> vector<8x128xf32>
    %275 = arith.addf %273, %274 : vector<8x128xf32>
    %cst_129 = arith.constant 5.000000e-01 : f32
    %276 = vector.broadcast %cst_129 : f32 to vector<8x128xf32>
    %277 = arith.mulf %276, %275 : vector<8x128xf32>
    %278 = math.tanh %277 : vector<8x128xf32>
    %cst_130 = arith.constant 5.000000e-01 : f32
    %279 = vector.broadcast %cst_130 : f32 to vector<8x128xf32>
    %280 = arith.mulf %279, %278 : vector<8x128xf32>
    %cst_131 = arith.constant 5.000000e-01 : f32
    %281 = vector.broadcast %cst_131 : f32 to vector<8x128xf32>
    %282 = arith.addf %280, %281 : vector<8x128xf32>
    %283 = arith.index_cast %c7_i32 : i32 to index
    %c0_132 = arith.constant 0 : index
    %c0_133 = arith.constant 0 : index
    %284 = vector.load %arg4[%283, %c0_132, %c0_133] : memref<8x8x128xf32, #tpu.memory_space<vmem>>, vector<1x8x128xf32>
    %285 = vector.shape_cast %284 : vector<1x8x128xf32> to vector<8x128xf32>
    %286 = arith.mulf %282, %258 : vector<8x128xf32>
    %cst_134 = arith.constant dense<0.000000e+00> : vector<8x128xf32>
    %287 = tpu.matmul %286, %5, %cst_134 {dimension_numbers = #tpu.dot_dimension_numbers<[1], [0], [0], [1], [0, 0, 1, 1], [], []>} : vector<8x128xf32>, vector<128x128xf32>, vector<8x128xf32> -> vector<8x128xf32>
    %288 = arith.addf %285, %287 : vector<8x128xf32>
    %289 = math.tanh %288 : vector<8x128xf32>
    %cst_135 = arith.constant 1.000000e+00 : f32
    %290 = vector.broadcast %cst_135 : f32 to vector<8x128xf32>
    %291 = arith.subf %290, %270 : vector<8x128xf32>
    %292 = arith.mulf %291, %258 : vector<8x128xf32>
    %293 = arith.mulf %270, %289 : vector<8x128xf32>
    %294 = arith.addf %292, %293 : vector<8x128xf32>
    %c8_i32 = arith.constant 8 : i32
    %c0_136 = arith.constant 0 : index
    %c0_137 = arith.constant 0 : index
    %295 = vector.load %arg8[%c0_136, %c0_137] : memref<8x128xf32, #tpu.memory_space<vmem>>, vector<8x128xf32>
    tpu.vector_store %arg8[%c0_136, %c0_137], %294 {strides = array<i32>} : memref<8x128xf32, #tpu.memory_space<vmem>>, vector<8x128xf32>,
    return
  }
  func.func @transform_0(%arg0: i32, %arg1: i32) -> (i32, i32, i32) {
    %c0_i32 = arith.constant 0 : i32
    %c0_i32_0 = arith.constant 0 : i32
    return %arg1, %arg0, %c0_i32 : i32, i32, i32
  }
  func.func @transform_1(%arg0: i32, %arg1: i32) -> (i32, i32, i32) {
    %c0_i32 = arith.constant 0 : i32
    %c0_i32_0 = arith.constant 0 : i32
    return %arg1, %arg0, %c0_i32 : i32, i32, i32
  }
  func.func @transform_2(%arg0: i32, %arg1: i32) -> (i32, i32, i32) {
    %c0_i32 = arith.constant 0 : i32
    %c0_i32_0 = arith.constant 0 : i32
    return %arg1, %arg0, %c0_i32 : i32, i32, i32
  }
  func.func @transform_3(%arg0: i32, %arg1: i32) -> (i32, i32) {
    %c0_i32 = arith.constant 0 : i32
    %c0_i32_0 = arith.constant 0 : i32
    %c0_i32_1 = arith.constant 0 : i32
    return %c0_i32, %c0_i32_0 : i32, i32
  }
  func.func @transform_4(%arg0: i32, %arg1: i32) -> (i32, i32) {
    %c0_i32 = arith.constant 0 : i32
    %c0_i32_0 = arith.constant 0 : i32
    %c0_i32_1 = arith.constant 0 : i32
    return %c0_i32, %c0_i32_0 : i32, i32
  }
  func.func @transform_5(%arg0: i32, %arg1: i32) -> (i32, i32) {
    %c0_i32 = arith.constant 0 : i32
    %c0_i32_0 = arith.constant 0 : i32
    %c0_i32_1 = arith.constant 0 : i32
    return %c0_i32, %c0_i32_0 : i32, i32
  }
  func.func @transform_6(%arg0: i32, %arg1: i32) -> (i32, i32) {
    %c0_i32 = arith.constant 0 : i32
    %c0_i32_0 = arith.constant 0 : i32
    return %arg0, %c0_i32 : i32, i32
  }
}

</mosaic_0001>

<bundles_post_ra>
// kernel: gru_forward.2
= control target key start
LH: loop header
LB: loop body
LE: loop exit
PB: predicated region body
PF: predicated region fallthrough
CT: control target
= control target key end

     0   :  { %v380_v3 = vmov 0.0   ;;  %vm48_vm0 = vcmask 130048   ;;  %v33_v18 = vlaneseq  ;;  %s564_s1 = inlined_call_operand.vmem [shape: f32[16,384], index: 1, kind: input, shape index: {}]   ;;  %s565_s0 = inlined_call_operand.vmem [shape: f32[8,8,16], index: 0, kind: input, shape index: {}]   ;;  %s566_s2 = inlined_call_operand.vmem [shape: f32[1,384], index: 2, kind: input, shape index: {}]   ;;  %s567_s3 = inlined_call_operand.vmem [shape: f32[8,8,128], index: 3, kind: output, shape index: {0}]   ;;  %s568_s4 = inlined_call_operand.vmem [shape: f32[8,8,128], index: 4, kind: output, shape index: {1}]   ;;  %s569_s5 = inlined_call_operand.vmem [shape: f32[8,8,128], index: 5, kind: output, shape index: {2}]  }
   0x1   :  { %v26_v0 = vld [vmem:[%s564_s1 + $0x8] sm:$0xff]  ;;  %v29_v1 = vld [vmem:[%s564_s1 + $0x20] sm:$0xff]  ;;  %137 = vmatprep.mubr.f32.mxu0 %v380_v3  ;;  %173 = vmatprep.mubr.f32.mxu1 %v380_v3  ;;  %v28_v5 = vld [vmem:[%s564_s1 + $0x18] sm:$0xff] }
   0x2   :  { %v25_v2 = vld [vmem:[%s564_s1] sm:$0xff]  ;;  %v369_v4 = vpack.c.bf16 %v29_v1, %v26_v0  ;;  %v27_v7 = vld [vmem:[%s564_s1 + $0x10] sm:$0xff]  ;;  %v30_v8 = vld [vmem:[%s564_s1 + $0x28] sm:$0xff]  ;;  %v34_v19 = vshrl.u32 %v33_v18, 7 }
   0x3   :  { %v371_v6 = vpack.c.bf16 %v28_v5, %v25_v2  ;;  %v373_v9 = vpack.c.bf16 %v30_v8, %v27_v7  ;;  %v17_v10 = vld [vmem:[%s565_s0] sm:$0xff]  ;;  %v23_v11 = vld [vmem:[%s565_s0 + $0x30] sm:$0xff]  ;;  %v18_v12 = vld [vmem:[%s565_s0 + $0x8] sm:$0xff] }
   0x4   :  { %370 = vmatprep.subr.bf16.mxu0 %v369_v4  ;;  %377 = vmatprep.subr.bf16.mxu1 %v369_v4  ;;  %v24_v13 = vld [vmem:[%s565_s0 + $0x38] sm:$0xff]  ;;  %v19_v14 = vld [vmem:[%s565_s0 + $0x10] sm:$0xff]  ;;  %v21_v16 = vld [vmem:[%s565_s0 + $0x20] sm:$0xff]  ;;  %v35_v20 = vsub.s32 0, %v34_v19  ;;  %v39_v22 = vsub.s32 1, %v34_v19  ;;  %v43_v31 = vsub.s32 2, %v34_v19 }
   0x5   :  { %372 = vmatpush1.bf16.msra.mxu0 %v371_v6  ;;  %378 = vmatpush1.bf16.msra.mxu1 %v371_v6  ;;  %v20_v15 = vld [vmem:[%s565_s0 + $0x18] sm:$0xff]  ;;  %v22_v17 = vld [vmem:[%s565_s0 + $0x28] sm:$0xff]  ;;  %v31_v21 = vld [vmem:[%s566_s2] sm:$0x7] }
   0x6   :  { %374 = vmatprep.subr.bf16.mxu1 %v373_v9  ;;  %v472_v23 = vrot.slane %v31_v21, %v35_v20  ;;  %v474_v24 = vrot.slane %v31_v21, %v39_v22  ;;  %v44_v40 = vrot.slane %v31_v21, %v43_v31 }
   0x8   :  { %327 = vmatmul.mubr.msk.f32.vlgmr.msra.gmra.mrb[0].mxu0 %vm48_vm0, %v17_v10  ;;  %333 = vmatmul.mubr.msk.f32.vlgmr.msra.gmra.mrb[0].mxu1 %vm48_vm0, %v23_v11 }
   0x9   :  { %376 = vmatpush3.bf16.msra.mxu1 %v373_v9  ;;  %143 = vmatprep.mubr.f32.mxu0 %v380_v3 }
   0xa   :  { %179 = vmatprep.mubr.f32.mxu1 %v380_v3 }
   0xc   :  { %328 = vmatmul.mubr.msk.f32.gmra.mrb[2].mxu0 %vm48_vm0, %v18_v12  ;;  %334 = vmatmul.mubr.msk.f32.gmra.mrb[2].mxu1 %vm48_vm0, %v24_v13 }
   0xd   :  { %149 = vmatprep.mubr.f32.mxu0 %v380_v3  ;;  %357 = vmatprep.mubr.msk.f32.mxu1 %vm48_vm0, %v17_v10 }
  0x10   :  { %329 = vmatmul.mubr.msk.f32.gmra.mrb[4].mxu0 %vm48_vm0, %v19_v14  ;;  %358 = vmatmul.mubr.msk.f32.vlgmr.msra.gmra.mrb[4].mxu1 %vm48_vm0, %v18_v12 }
  0x11   :  { %155 = vmatprep.mubr.f32.mxu0 %v380_v3  ;;  %360 = vmatprep.mubr.msk.f32.mxu1 %vm48_vm0, %v19_v14 }
  0x14   :  { %330 = vmatmul.mubr.msk.f32.gmra.mrb[6].mxu0 %vm48_vm0, %v20_v15  ;;  %361 = vmatmul.mubr.msk.f32.gmra.mrb[6].mxu1 %vm48_vm0, %v20_v15 }
  0x15   :  { %161 = vmatprep.mubr.f32.mxu0 %v380_v3  ;;  %363 = vmatprep.mubr.msk.f32.mxu1 %vm48_vm0, %v21_v16 }
  0x18   :  { %331 = vmatmul.mubr.msk.f32.gmra.mrb[8].mxu0 %vm48_vm0, %v21_v16  ;;  %364 = vmatmul.mubr.msk.f32.gmra.mrb[8].mxu1 %vm48_vm0, %v22_v17 }
  0x19   :  { %167 = vmatprep.mubr.f32.mxu0 %v380_v3  ;;  %366 = vmatprep.mubr.msk.f32.mxu1 %vm48_vm0, %v23_v11 }
  0x1c   :  { %332 = vmatmul.mubr.msk.f32.gmra.mrb[10].mxu0 %vm48_vm0, %v22_v17  ;;  %367 = vmatmul.mubr.msk.f32.gmra.mrb[10].mxu1 %vm48_vm0, %v24_v13 }
  0xdb   :  { %v139_v25 = vpop.f32.mrb[0].mxu0  ;;  %v175_v26 = vpop.f32.mrb[0].mxu1 }
  0xdc   :  { %v140_v27 = vadd.f32 %v139_v25, %v472_v23  ;;  %v176_v28 = vadd.f32 %v175_v26, %v472_v23  ;;  %v141_v29 = vpop.f32.mrb[1].mxu0  ;;  %v177_v30 = vpop.f32.mrb[1].mxu1 }
  0xdd   :  { %v142_v32 = vadd.f32 %v141_v29, %v474_v24  ;;  %v178_v33 = vadd.f32 %v177_v30, %v474_v24 }
  0xde   :  { %291 = vst [vmem:[%s567_s3] sm:$0xff] %v140_v27  ;;  %297 = vst [vmem:[%s567_s3 + $0x30] sm:$0xff] %v176_v28 }
  0xdf   :  { %299 = vst [vmem:[%s568_s4] sm:$0xff] %v142_v32  ;;  %305 = vst [vmem:[%s568_s4 + $0x30] sm:$0xff] %v178_v33  ;;  %v145_v34 = vpop.f32.mrb[2].mxu0  ;;  %v181_v35 = vpop.f32.mrb[2].mxu1 }
  0xe0   :  { %v146_v36 = vadd.f32 %v145_v34, %v472_v23  ;;  %v182_v37 = vadd.f32 %v181_v35, %v472_v23  ;;  %v147_v38 = vpop.f32.mrb[3].mxu0  ;;  %v183_v39 = vpop.f32.mrb[3].mxu1 }
  0xe1   :  { %v148_v41 = vadd.f32 %v147_v38, %v474_v24  ;;  %v184_v42 = vadd.f32 %v183_v39, %v474_v24 }
  0xe2   :  { %292 = vst [vmem:[%s567_s3 + $0x8] sm:$0xff] %v146_v36  ;;  %298 = vst [vmem:[%s567_s3 + $0x38] sm:$0xff] %v182_v37 }
  0xe3   :  { %300 = vst [vmem:[%s568_s4 + $0x8] sm:$0xff] %v148_v41  ;;  %306 = vst [vmem:[%s568_s4 + $0x38] sm:$0xff] %v184_v42  ;;  %v151_v43 = vpop.f32.mrb[4].mxu0  ;;  %v359_v44 = vpop.f32.mrb[4].mxu1 }
  0xe4   :  { %v152_v45 = vadd.f32 %v151_v43, %v472_v23  ;;  %v258_v46 = vadd.f32 %v359_v44, %v44_v40  ;;  %v153_v47 = vpop.f32.mrb[5].mxu0  ;;  %v252_v48 = vpop.f32.mrb[5].mxu1 }
  0xe5   :  { %v154_v49 = vadd.f32 %v153_v47, %v474_v24  ;;  %v253_v50 = vadd.f32 %v252_v48, %v44_v40 }
  0xe6   :  { %293 = vst [vmem:[%s567_s3 + $0x10] sm:$0xff] %v152_v45  ;;  %308 = vst [vmem:[%s569_s5 + $0x8] sm:$0xff] %v258_v46 }
  0xe7   :  { %301 = vst [vmem:[%s568_s4 + $0x10] sm:$0xff] %v154_v49  ;;  %307 = vst [vmem:[%s569_s5] sm:$0xff] %v253_v50  ;;  %v157_v51 = vpop.f32.mrb[6].mxu0  ;;  %v362_v52 = vpop.f32.mrb[6].mxu1 }
  0xe8   :  { %v158_v53 = vadd.f32 %v157_v51, %v472_v23  ;;  %v268_v54 = vadd.f32 %v362_v52, %v44_v40  ;;  %v159_v55 = vpop.f32.mrb[7].mxu0  ;;  %v262_v56 = vpop.f32.mrb[7].mxu1 }
  0xe9   :  { %v160_v57 = vadd.f32 %v159_v55, %v474_v24  ;;  %v263_v58 = vadd.f32 %v262_v56, %v44_v40 }
  0xea   :  { %294 = vst [vmem:[%s567_s3 + $0x18] sm:$0xff] %v158_v53  ;;  %310 = vst [vmem:[%s569_s5 + $0x18] sm:$0xff] %v268_v54 }
  0xeb   :  { %302 = vst [vmem:[%s568_s4 + $0x18] sm:$0xff] %v160_v57  ;;  %309 = vst [vmem:[%s569_s5 + $0x10] sm:$0xff] %v263_v58  ;;  %v163_v59 = vpop.f32.mrb[8].mxu0  ;;  %v365_v60 = vpop.f32.mrb[8].mxu1 }
  0xec   :  { %v164_v61 = vadd.f32 %v163_v59, %v472_v23  ;;  %v278_v62 = vadd.f32 %v365_v60, %v44_v40  ;;  %v165_v63 = vpop.f32.mrb[9].mxu0  ;;  %v272_v0 = vpop.f32.mrb[9].mxu1 }
  0xed   :  { %v166_v1 = vadd.f32 %v165_v63, %v474_v24  ;;  %v273_v2 = vadd.f32 %v272_v0, %v44_v40 }
  0xee   :  { %295 = vst [vmem:[%s567_s3 + $0x20] sm:$0xff] %v164_v61  ;;  %312 = vst [vmem:[%s569_s5 + $0x28] sm:$0xff] %v278_v62 }
  0xef   :  { %303 = vst [vmem:[%s568_s4 + $0x20] sm:$0xff] %v166_v1  ;;  %311 = vst [vmem:[%s569_s5 + $0x20] sm:$0xff] %v273_v2  ;;  %v169_v3 = vpop.f32.mrb[10].mxu0  ;;  %v368_v4 = vpop.f32.mrb[10].mxu1 }
  0xf0   :  { %v170_v5 = vadd.f32 %v169_v3, %v472_v23  ;;  %v288_v6 = vadd.f32 %v368_v4, %v44_v40  ;;  %v171_v7 = vpop.f32.mrb[11].mxu0  ;;  %v282_v8 = vpop.f32.mrb[11].mxu1 }
  0xf1   :  { %v172_v9 = vadd.f32 %v171_v7, %v474_v24  ;;  %v283_v10 = vadd.f32 %v282_v8, %v44_v40 }
  0xf2   :  { %296 = vst [vmem:[%s567_s3 + $0x28] sm:$0xff] %v170_v5  ;;  %314 = vst [vmem:[%s569_s5 + $0x38] sm:$0xff] %v288_v6 }
  0xf3   :  { %304 = vst [vmem:[%s568_s4 + $0x28] sm:$0xff] %v172_v9  ;;  %313 = vst [vmem:[%s569_s5 + $0x30] sm:$0xff] %v283_v10 }

// kernel: gru_forward.3
= control target key start
LH: loop header
LB: loop body
LE: loop exit
PB: predicated region body
PF: predicated region fallthrough
CT: control target
= control target key end

     0   :  { %v3839_v0 = vmov 0.0|0.0   ;;  %vm3840_vm0 = vmmov 0   ;;  %v3841_v4 = vmov 0.0   ;;  %s4614_s4 = inlined_call_operand.vmem [shape: f32[128,128], index: 4, kind: input, shape index: {}]   ;;  %s4615_s3 = inlined_call_operand.vmem [shape: f32[128,128], index: 3, kind: input, shape index: {}]   ;;  %s4616_s5 = inlined_call_operand.vmem [shape: f32[128,128], index: 5, kind: input, shape index: {}]   ;;  %s4617_s1 = inlined_call_operand.vmem [shape: f32[8,8,128], index: 1, kind: input, shape index: {}]   ;;  %s4618_s0 = inlined_call_operand.vmem [shape: f32[8,8,128], index: 0, kind: input, shape index: {}]   ;;  %s4619_s2 = inlined_call_operand.vmem [shape: f32[8,8,128], index: 2, kind: input, shape index: {}]   ;;  %s4620_s6 = inlined_call_operand.vmem [shape: f32[8,128], index: 6, kind: output, shape index: {}]  }
   0x1   :  { %3236 = vmatprep.subr.bf16.mxu1 %v3839_v0  ;;  %v44_v1 = vld [vmem:[%s4614_s4] sm:$0xff]  ;;  %v45_v2 = vld [vmem:[%s4614_s4 + $0x8] sm:$0xff]  ;;  %v46_v3 = vld [vmem:[%s4614_s4 + $0x10] sm:$0xff]  ;;  %2439 = vmatprep.mubr.msk.f32.mxu1 %vm3840_vm0, %v3841_v4 }
   0x2   :  { %v3889_v5 = vpack.c.bf16 %v45_v2, %v44_v1  ;;  %v47_v6 = vld [vmem:[%s4614_s4 + $0x18] sm:$0xff]  ;;  %3212 = vmatprep.subr.bf16.mxu0 %v3839_v0  ;;  %2404 = vmatprep.mubr.msk.f32.mxu0 %vm3840_vm0, %v3841_v4  ;;  %v48_v8 = vld [vmem:[%s4614_s4 + $0x20] sm:$0xff]  ;;  %v49_v9 = vld [vmem:[%s4614_s4 + $0x28] sm:$0xff] }
   0x3   :  { %v3898_v7 = vpack.c.bf16 %v47_v6, %v46_v3  ;;  %v28_v10 = vld [vmem:[%s4615_s3] sm:$0xff]  ;;  %v29_v11 = vld [vmem:[%s4615_s3 + $0x8] sm:$0xff]  ;;  %v30_v13 = vld [vmem:[%s4615_s3 + $0x10] sm:$0xff]  ;;  %v3922_v15 = vpack.c.bf16 %v49_v9, %v48_v8 }
   0x4   :  { %3238 = vmatpush3.bf16.msra.mxu1 %v3889_v5  ;;  %v3913_v12 = vpack.c.bf16 %v29_v11, %v28_v10  ;;  %v31_v14 = vld [vmem:[%s4615_s3 + $0x18] sm:$0xff]  ;;  %v50_v16 = vld [vmem:[%s4614_s4 + $0x30] sm:$0xff]  ;;  %v32_v19 = vld [vmem:[%s4615_s3 + $0x20] sm:$0xff] }
   0x5   :  { %3239 = vmatprep.subr.bf16.mxu1 %v3839_v0  ;;  %v51_v17 = vld [vmem:[%s4614_s4 + $0x38] sm:$0xff]  ;;  %v3932_v18 = vpack.c.bf16 %v31_v14, %v30_v13  ;;  %v33_v20 = vld [vmem:[%s4615_s3 + $0x28] sm:$0xff]  ;;  %v52_v22 = vld [vmem:[%s4614_s4 + $0x40] sm:$0xff] }
   0x6   :  { %3214 = vmatpush3.bf16.msra.mxu0 %v3913_v12  ;;  %v3942_v21 = vpack.c.bf16 %v51_v17, %v50_v16  ;;  %v53_v23 = vld [vmem:[%s4614_s4 + $0x48] sm:$0xff]  ;;  %v3952_v24 = vpack.c.bf16 %v33_v20, %v32_v19  ;;  %v34_v25 = vld [vmem:[%s4615_s3 + $0x30] sm:$0xff]  ;;  %v35_v26 = vld [vmem:[%s4615_s3 + $0x38] sm:$0xff] }
   0x7   :  { %3215 = vmatprep.subr.bf16.mxu0 %v3839_v0  ;;  %v3962_v27 = vpack.c.bf16 %v53_v23, %v52_v22  ;;  %v54_v28 = vld [vmem:[%s4614_s4 + $0x50] sm:$0xff]  ;;  %v55_v29 = vld [vmem:[%s4614_s4 + $0x58] sm:$0xff]  ;;  %v3972_v30 = vpack.c.bf16 %v35_v26, %v34_v25  ;;  %v36_v31 = vld [vmem:[%s4615_s3 + $0x40] sm:$0xff] }
   0x8   :  { %3241 = vmatpush3.bf16.msra.mxu1 %v3898_v7  ;;  %v37_v32 = vld [vmem:[%s4615_s3 + $0x48] sm:$0xff]  ;;  %v3982_v33 = vpack.c.bf16 %v55_v29, %v54_v28  ;;  %v56_v34 = vld [vmem:[%s4614_s4 + $0x60] sm:$0xff]  ;;  %v38_v37 = vld [vmem:[%s4615_s3 + $0x50] sm:$0xff] }
   0x9   :  { %3242 = vmatprep.subr.bf16.mxu1 %v3839_v0  ;;  %v57_v35 = vld [vmem:[%s4614_s4 + $0x68] sm:$0xff]  ;;  %v3992_v36 = vpack.c.bf16 %v37_v32, %v36_v31  ;;  %v39_v38 = vld [vmem:[%s4615_s3 + $0x58] sm:$0xff]  ;;  %v58_v40 = vld [vmem:[%s4614_s4 + $0x70] sm:$0xff] }
   0xa   :  { %3217 = vmatpush3.bf16.msra.mxu0 %v3932_v18  ;;  %v4002_v39 = vpack.c.bf16 %v57_v35, %v56_v34  ;;  %v59_v41 = vld [vmem:[%s4614_s4 + $0x78] sm:$0xff]  ;;  %v4012_v42 = vpack.c.bf16 %v39_v38, %v38_v37  ;;  %v40_v43 = vld [vmem:[%s4615_s3 + $0x60] sm:$0xff]  ;;  %v41_v44 = vld [vmem:[%s4615_s3 + $0x68] sm:$0xff] }
   0xb   :  { %3218 = vmatprep.subr.bf16.mxu0 %v3839_v0  ;;  %v4022_v45 = vpack.c.bf16 %v59_v41, %v58_v40  ;;  %v4026_v46 = vpack.c.bf16 %v41_v44, %v40_v43  ;;  %v42_v47 = vld [vmem:[%s4615_s3 + $0x70] sm:$0xff]  ;;  %v43_v48 = vld [vmem:[%s4615_s3 + $0x78] sm:$0xff]  ;;  %v60_v50 = vld [vmem:[%s4616_s5] sm:$0xff] }
   0xc   :  { %3244 = vmatpush3.bf16.msra.mxu1 %v3922_v15  ;;  %v4037_v49 = vpack.c.bf16 %v43_v48, %v42_v47  ;;  %v61_v51 = vld [vmem:[%s4616_s5 + $0x8] sm:$0xff]  ;;  %v62_v53 = vld [vmem:[%s4616_s5 + $0x10] sm:$0xff]  ;;  %v63_v54 = vld [vmem:[%s4616_s5 + $0x18] sm:$0xff] }
   0xd   :  { %3245 = vmatprep.subr.bf16.mxu1 %v3839_v0  ;;  %v4052_v52 = vpack.c.bf16 %v61_v51, %v60_v50  ;;  %v4065_v55 = vpack.c.bf16 %v63_v54, %v62_v53  ;;  %v64_v56 = vld [vmem:[%s4616_s5 + $0x20] sm:$0xff]  ;;  %v65_v57 = vld [vmem:[%s4616_s5 + $0x28] sm:$0xff]  ;;  %v66_v59 = vld [vmem:[%s4616_s5 + $0x30] sm:$0xff] }
   0xe   :  { %3220 = vmatpush3.bf16.msra.mxu0 %v3952_v24  ;;  %v4079_v58 = vpack.c.bf16 %v65_v57, %v64_v56  ;;  %v67_v60 = vld [vmem:[%s4616_s5 + $0x38] sm:$0xff]  ;;  %v68_v62 = vld [vmem:[%s4616_s5 + $0x40] sm:$0xff]  ;;  %v69_v63 = vld [vmem:[%s4616_s5 + $0x48] sm:$0xff] }
   0xf   :  { %3221 = vmatprep.subr.bf16.mxu0 %v3839_v0  ;;  %v4101_v61 = vpack.c.bf16 %v67_v60, %v66_v59  ;;  %v4111_v1 = vpack.c.bf16 %v69_v63, %v68_v62  ;;  %v70_v2 = vld [vmem:[%s4616_s5 + $0x50] sm:$0xff]  ;;  %v71_v3 = vld [vmem:[%s4616_s5 + $0x58] sm:$0xff]  ;;  %v72_v8 = vld [vmem:[%s4616_s5 + $0x60] sm:$0xff] }
  0x10   :  { %3247 = vmatpush3.bf16.msra.mxu1 %v3942_v21  ;;  %v4121_v6 = vpack.c.bf16 %v71_v3, %v70_v2  ;;  %v73_v9 = vld [vmem:[%s4616_s5 + $0x68] sm:$0xff]  ;;  %v74_v11 = vld [vmem:[%s4616_s5 + $0x70] sm:$0xff]  ;;  %v75_v13 = vld [vmem:[%s4616_s5 + $0x78] sm:$0xff] }
  0x11   :  { %3248 = vmatprep.subr.bf16.mxu1 %v3839_v0  ;;  %v4131_v10 = vpack.c.bf16 %v73_v9, %v72_v8  ;;  %v4141_v14 = vpack.c.bf16 %v75_v13, %v74_v11  ;;  %v153_v16 = vld [vmem:[%s4617_s1] sm:$0xff]  ;;  %v1944_v56 = vld [vmem:[%s4617_s1 + $0x8] sm:$0xff] }
  0x12   :  { %3223 = vmatpush3.bf16.msra.mxu0 %v3972_v30  ;;  %v77_v32 = vld [vmem:[%s4618_s0] sm:$0xff]  ;;  %v1943_v13 = vld [vmem:[%s4618_s0 + $0x8] sm:$0xff] }
  0x13   :  { %3224 = vmatprep.subr.bf16.mxu0 %v3839_v0  ;;  %v229_v37 = vld [vmem:[%s4619_s2] sm:$0xff] }
  0x14   :  { %3250 = vmatpush3.bf16.msra.mxu1 %v3962_v27 }
  0x15   :  { %3251 = vmatprep.subr.bf16.mxu1 %v3839_v0 }
  0x16   :  { %3226 = vmatpush3.bf16.msra.mxu0 %v3992_v36 }
  0x17   :  { %3227 = vmatprep.subr.bf16.mxu0 %v3839_v0 }
  0x18   :  { %3253 = vmatpush3.bf16.msra.mxu1 %v3982_v33 }
  0x19   :  { %3254 = vmatprep.subr.bf16.mxu1 %v3839_v0 }
  0x1a   :  { %3229 = vmatpush3.bf16.msra.mxu0 %v4012_v42 }
  0x1b   :  { %3230 = vmatprep.subr.bf16.mxu0 %v3839_v0 }
  0x1c   :  { %3256 = vmatpush3.bf16.msra.mxu1 %v4002_v39 }
  0x1d   :  { %3257 = vmatprep.subr.bf16.mxu1 %v3839_v0 }
  0x1e   :  { %3232 = vmatpush3.bf16.msra.mxu0 %v4026_v46 }
  0x1f   :  { %3233 = vmatprep.subr.bf16.mxu0 %v3839_v0 }
  0x20   :  { %3259 = vmatpush3.bf16.msra.mxu1 %v4022_v45 }
  0x21   :  { %3284 = vmatprep.subr.bf16.mxu1 %v3839_v0 }
  0x22   :  { %3235 = vmatpush3.bf16.msra.mxu0 %v4037_v49 }
  0x23   :  { %2440 = vmatmul.mubr.f32.vlgmr.msra.gmra.mrb[0].mxu1 %v3841_v4  ;;  %3260 = vmatprep.subr.bf16.mxu0 %v3839_v0 }
  0x24   :  { %3286 = vmatpush3.bf16.msra.mxu1 %v3913_v12  ;;  %2509 = vmatprep.mubr.msk.f32.mxu1 %vm3840_vm0, %v3841_v4 }
  0x25   :  { %3287 = vmatprep.subr.bf16.mxu1 %v3839_v0  ;;  %2405 = vmatmul.mubr.f32.vlgmr.msra.gmra.mrb[0].mxu0 %v3841_v4 }
  0x26   :  { %3262 = vmatpush3.bf16.msra.mxu0 %v4052_v52  ;;  %2474 = vmatprep.mubr.msk.f32.mxu0 %vm3840_vm0, %v3841_v4 }
  0x27   :  { %3263 = vmatprep.subr.bf16.mxu0 %v3839_v0 }
  0x28   :  { %3289 = vmatpush3.bf16.msra.mxu1 %v3932_v18 }
  0x29   :  { %3290 = vmatprep.subr.bf16.mxu1 %v3839_v0 }
  0x2a   :  { %3265 = vmatpush3.bf16.msra.mxu0 %v4065_v55 }
  0x2b   :  { %3266 = vmatprep.subr.bf16.mxu0 %v3839_v0 }
  0x2c   :  { %3292 = vmatpush3.bf16.msra.mxu1 %v3952_v24 }
  0x2d   :  { %3293 = vmatprep.subr.bf16.mxu1 %v3839_v0 }
  0x2e   :  { %3268 = vmatpush3.bf16.msra.mxu0 %v4079_v58 }
  0x2f   :  { %3269 = vmatprep.subr.bf16.mxu0 %v3839_v0 }
  0x30   :  { %3295 = vmatpush3.bf16.msra.mxu1 %v3972_v30 }
  0x31   :  { %3296 = vmatprep.subr.bf16.mxu1 %v3839_v0 }
  0x32   :  { %3271 = vmatpush3.bf16.msra.mxu0 %v4101_v61 }
  0x33   :  { %3272 = vmatprep.subr.bf16.mxu0 %v3839_v0 }
  0x34   :  { %3298 = vmatpush3.bf16.msra.mxu1 %v3992_v36 }
  0x35   :  { %3299 = vmatprep.subr.bf16.mxu1 %v3839_v0 }
  0x36   :  { %3274 = vmatpush3.bf16.msra.mxu0 %v4111_v1 }
  0x37   :  { %3275 = vmatprep.subr.bf16.mxu0 %v3839_v0 }
  0x38   :  { %3301 = vmatpush3.bf16.msra.mxu1 %v4012_v42 }
  0x39   :  { %3302 = vmatprep.subr.bf16.mxu1 %v3839_v0 }
  0x3a   :  { %3277 = vmatpush3.bf16.msra.mxu0 %v4121_v6 }
  0x3b   :  { %3278 = vmatprep.subr.bf16.mxu0 %v3839_v0 }
  0x3c   :  { %3304 = vmatpush3.bf16.msra.mxu1 %v4026_v46 }
  0x3d   :  { %3305 = vmatprep.subr.bf16.mxu1 %v3839_v0 }
  0x3e   :  { %3280 = vmatpush3.bf16.msra.mxu0 %v4131_v10 }
  0x3f   :  { %3281 = vmatprep.subr.bf16.mxu0 %v3839_v0 }
  0x40   :  { %3307 = vmatpush3.bf16.msra.mxu1 %v4037_v49 }
  0x41   :  { %3332 = vmatprep.subr.bf16.mxu1 %v3839_v0 }
  0x42   :  { %3283 = vmatpush3.bf16.msra.mxu0 %v4141_v14 }
  0x43   :  { %3308 = vmatprep.subr.bf16.mxu0 %v3839_v0 }
  0xf6   :  { %v220_v17 = vpop.f32.mrb[0].mxu1 }
  0xf7   :  { %v224_v19 = vadd.f32 %v220_v17, %v153_v16  ;;  %v2441_v20 = vpop.f32.mrb[1].mxu1 }
  0xf8   :  { %v144_v23 = vpop.f32.mrb[0].mxu0 }
  0xf9   :  { %v225_v22 = vmul.f32 0.5, %v224_v19  ;;  %v2406_v25 = vpop.f32.mrb[1].mxu0  ;;  %v148_v34 = vadd.f32 %v144_v23, %v77_v32  ;;  %v1945_v19 = vld [vmem:[%s4619_s2 + $0x8] sm:$0xff] }
  0xfb   :  { %3791 = vtanh.f32 %v225_v22  ;;  %v149_v35 = vmul.f32 0.5, %v148_v34 }
  0xfd   :  { %3793 = vtanh.f32 %v149_v35 }
 0x105   :  { %v3792_v26 = vpop.eup %3791 }
 0x106   :  { %v227_v28 = vmul.f32 0.5, %v3792_v26 }
 0x107   :  { %v3794_v38 = vpop.eup %3793 }
 0x108   :  { %v228_v29 = vadd.f32 0.5, %v227_v28  ;;  %v151_v44 = vmul.f32 0.5, %v3794_v38 }
 0x10a   :  { %v230_v31 = vmul.f32 0.0, %v228_v29  ;;  %v152_v47 = vadd.f32 0.5, %v151_v44 }
 0x10c   :  { %2475 = vmatmul.mubr.f32.vlgmr.msra.gmra.mrb[2].mxu0 %v230_v31  ;;  %v303_v48 = vsub.f32 1.0, %v152_v47 }
 0x10d   :  { %3310 = vmatpush3.bf16.msra.mxu0 %v3889_v5  ;;  %2544 = vmatprep.mubr.msk.f32.mxu0 %vm3840_vm0, %v3841_v4 }
 0x10e   :  { %3311 = vmatprep.subr.bf16.mxu0 %v3839_v0  ;;  %v304_v51 = vmul.f32 0.0, %v303_v48 }
 0x111   :  { %3313 = vmatpush3.bf16.msra.mxu0 %v3898_v7 }
 0x112   :  { %3314 = vmatprep.subr.bf16.mxu0 %v3839_v0 }
 0x115   :  { %3316 = vmatpush3.bf16.msra.mxu0 %v3922_v15 }
 0x116   :  { %3317 = vmatprep.subr.bf16.mxu0 %v3839_v0 }
 0x119   :  { %3319 = vmatpush3.bf16.msra.mxu0 %v3942_v21 }
 0x11a   :  { %3320 = vmatprep.subr.bf16.mxu0 %v3839_v0 }
 0x11d   :  { %3322 = vmatpush3.bf16.msra.mxu0 %v3962_v27 }
 0x11e   :  { %3323 = vmatprep.subr.bf16.mxu0 %v3839_v0 }
 0x121   :  { %3325 = vmatpush3.bf16.msra.mxu0 %v3982_v33 }
 0x122   :  { %3326 = vmatprep.subr.bf16.mxu0 %v3839_v0 }
 0x125   :  { %3328 = vmatpush3.bf16.msra.mxu0 %v4002_v39 }
 0x126   :  { %3329 = vmatprep.subr.bf16.mxu0 %v3839_v0 }
 0x129   :  { %3331 = vmatpush3.bf16.msra.mxu0 %v4022_v45 }
 0x12a   :  { %3356 = vmatprep.subr.bf16.mxu0 %v3839_v0 }
 0x1df   :  { %v297_v40 = vpop.f32.mrb[2].mxu0 }
 0x1e0   :  { %v301_v41 = vadd.f32 %v297_v40, %v229_v37  ;;  %v2476_v43 = vpop.f32.mrb[3].mxu0  ;;  %v1947_v37 = vld [vmem:[%s4617_s1 + $0x10] sm:$0xff] }
 0x1e2   :  { %3795 = vtanh.f32 %v301_v41 }
 0x1ec   :  { %v3796_v50 = vpop.eup %3795 }
 0x1ed   :  { %v305_v53 = vmul.f32 %v3796_v50, %v152_v47 }
 0x1ef   :  { %v4172_v54 = vadd.f32 %v305_v53, %v304_v51 }
 0x1f1   :  { %2510 = vmatmul.mubr.f32.vlgmr.msra.gmra.mrb[2].mxu1 %v4172_v54  ;;  %2545 = vmatmul.mubr.f32.vlgmr.msra.gmra.mrb[4].mxu0 %v4172_v54 }
 0x1f2   :  { %3334 = vmatpush3.bf16.msra.mxu1 %v4052_v52  ;;  %2579 = vmatprep.mubr.msk.f32.mxu1 %vm3840_vm0, %v3841_v4 }
 0x1f3   :  { %3335 = vmatprep.subr.bf16.mxu1 %v3839_v0  ;;  %3358 = vmatpush3.bf16.msra.mxu0 %v3913_v12 }
 0x1f4   :  { %3359 = vmatprep.subr.bf16.mxu0 %v3839_v0  ;;  %2614 = vmatprep.mubr.msk.f32.mxu0 %vm3840_vm0, %v3841_v4 }
 0x1f6   :  { %3337 = vmatpush3.bf16.msra.mxu1 %v4065_v55 }
 0x1f7   :  { %3338 = vmatprep.subr.bf16.mxu1 %v3839_v0  ;;  %3361 = vmatpush3.bf16.msra.mxu0 %v3932_v18 }
 0x1f8   :  { %3362 = vmatprep.subr.bf16.mxu0 %v3839_v0 }
 0x1fa   :  { %3340 = vmatpush3.bf16.msra.mxu1 %v4079_v58 }
 0x1fb   :  { %3341 = vmatprep.subr.bf16.mxu1 %v3839_v0  ;;  %3364 = vmatpush3.bf16.msra.mxu0 %v3952_v24 }
 0x1fc   :  { %3365 = vmatprep.subr.bf16.mxu0 %v3839_v0 }
 0x1fe   :  { %3343 = vmatpush3.bf16.msra.mxu1 %v4101_v61 }
 0x1ff   :  { %3344 = vmatprep.subr.bf16.mxu1 %v3839_v0  ;;  %3367 = vmatpush3.bf16.msra.mxu0 %v3972_v30 }
 0x200   :  { %3368 = vmatprep.subr.bf16.mxu0 %v3839_v0 }
 0x202   :  { %3346 = vmatpush3.bf16.msra.mxu1 %v4111_v1 }
 0x203   :  { %3347 = vmatprep.subr.bf16.mxu1 %v3839_v0  ;;  %3370 = vmatpush3.bf16.msra.mxu0 %v3992_v36 }
 0x204   :  { %3371 = vmatprep.subr.bf16.mxu0 %v3839_v0 }
 0x206   :  { %3349 = vmatpush3.bf16.msra.mxu1 %v4121_v6 }
 0x207   :  { %3350 = vmatprep.subr.bf16.mxu1 %v3839_v0  ;;  %3373 = vmatpush3.bf16.msra.mxu0 %v4012_v42 }
 0x208   :  { %3374 = vmatprep.subr.bf16.mxu0 %v3839_v0 }
 0x20a   :  { %3352 = vmatpush3.bf16.msra.mxu1 %v4131_v10 }
 0x20b   :  { %3353 = vmatprep.subr.bf16.mxu1 %v3839_v0  ;;  %3376 = vmatpush3.bf16.msra.mxu0 %v4026_v46 }
 0x20c   :  { %3377 = vmatprep.subr.bf16.mxu0 %v3839_v0 }
 0x20e   :  { %3355 = vmatpush3.bf16.msra.mxu1 %v4141_v14 }
 0x20f   :  { %3380 = vmatprep.subr.bf16.mxu1 %v3839_v0  ;;  %3379 = vmatpush3.bf16.msra.mxu0 %v4037_v49 }
 0x210   :  { %3404 = vmatprep.subr.bf16.mxu0 %v3839_v0 }
 0x2c4   :  { %v375_v57 = vpop.f32.mrb[2].mxu1  ;;  %v452_v59 = vpop.f32.mrb[4].mxu0 }
 0x2c5   :  { %v456_v60 = vadd.f32 %v1944_v56, %v452_v59  ;;  %v2511_v62 = vpop.f32.mrb[3].mxu1  ;;  %v2546_v63 = vpop.f32.mrb[5].mxu0  ;;  %v379_v16 = vadd.f32 %v1943_v13, %v375_v57  ;;  %v1948_v59 = vld [vmem:[%s4619_s2 + $0x10] sm:$0xff] }
 0x2c7   :  { %v457_v2 = vmul.f32 0.5, %v456_v60  ;;  %v380_v17 = vmul.f32 0.5, %v379_v16 }
 0x2c9   :  { %3797 = vtanh.f32 %v457_v2 }
 0x2ca   :  { %3799 = vtanh.f32 %v380_v17 }
 0x2d3   :  { %v3798_v3 = vpop.eup %3797 }
 0x2d4   :  { %v459_v8 = vmul.f32 0.5, %v3798_v3  ;;  %v3800_v20 = vpop.eup %3799 }
 0x2d5   :  { %v382_v26 = vmul.f32 0.5, %v3800_v20 }
 0x2d6   :  { %v460_v9 = vadd.f32 0.5, %v459_v8 }
 0x2d7   :  { %v383_v28 = vadd.f32 0.5, %v382_v26 }
 0x2d8   :  { %v463_v11 = vmul.f32 %v460_v9, %v4172_v54 }
 0x2d9   :  { %v536_v29 = vsub.f32 1.0, %v383_v28 }
 0x2da   :  { %2580 = vmatmul.mubr.f32.vlgmr.msra.gmra.mrb[4].mxu1 %v463_v11 }
 0x2db   :  { %3382 = vmatpush3.bf16.msra.mxu1 %v3889_v5  ;;  %2649 = vmatprep.mubr.msk.f32.mxu1 %vm3840_vm0, %v3841_v4  ;;  %v537_v32 = vmul.f32 %v536_v29, %v4172_v54  ;;  %v1946_v54 = vld [vmem:[%s4618_s0 + $0x10] sm:$0xff] }
 0x2dc   :  { %3383 = vmatprep.subr.bf16.mxu1 %v3839_v0 }
 0x2df   :  { %3385 = vmatpush3.bf16.msra.mxu1 %v3898_v7 }
 0x2e0   :  { %3386 = vmatprep.subr.bf16.mxu1 %v3839_v0 }
 0x2e3   :  { %3388 = vmatpush3.bf16.msra.mxu1 %v3922_v15 }
 0x2e4   :  { %3389 = vmatprep.subr.bf16.mxu1 %v3839_v0 }
 0x2e7   :  { %3391 = vmatpush3.bf16.msra.mxu1 %v3942_v21 }
 0x2e8   :  { %3392 = vmatprep.subr.bf16.mxu1 %v3839_v0 }
 0x2eb   :  { %3394 = vmatpush3.bf16.msra.mxu1 %v3962_v27 }
 0x2ec   :  { %3395 = vmatprep.subr.bf16.mxu1 %v3839_v0 }
 0x2ef   :  { %3397 = vmatpush3.bf16.msra.mxu1 %v3982_v33 }
 0x2f0   :  { %3398 = vmatprep.subr.bf16.mxu1 %v3839_v0 }
 0x2f3   :  { %3400 = vmatpush3.bf16.msra.mxu1 %v4002_v39 }
 0x2f4   :  { %3401 = vmatprep.subr.bf16.mxu1 %v3839_v0 }
 0x2f7   :  { %3403 = vmatpush3.bf16.msra.mxu1 %v4022_v45 }
 0x2f8   :  { %3428 = vmatprep.subr.bf16.mxu1 %v3839_v0 }
 0x3ad   :  { %v530_v22 = vpop.f32.mrb[4].mxu1 }
 0x3ae   :  { %v534_v23 = vadd.f32 %v1945_v19, %v530_v22  ;;  %v2581_v25 = vpop.f32.mrb[5].mxu1  ;;  %v1950_v19 = vld [vmem:[%s4617_s1 + $0x18] sm:$0xff] }
 0x3b0   :  { %3801 = vtanh.f32 %v534_v23 }
 0x3ba   :  { %v3802_v31 = vpop.eup %3801 }
 0x3bb   :  { %v538_v34 = vmul.f32 %v3802_v31, %v383_v28 }
 0x3bd   :  { %v4241_v35 = vadd.f32 %v538_v34, %v537_v32 }
 0x3bf   :  { %2615 = vmatmul.mubr.f32.vlgmr.msra.gmra.mrb[6].mxu0 %v4241_v35  ;;  %2650 = vmatmul.mubr.f32.vlgmr.msra.gmra.mrb[6].mxu1 %v4241_v35 }
 0x3c0   :  { %3406 = vmatpush3.bf16.msra.mxu0 %v4052_v52  ;;  %2684 = vmatprep.mubr.msk.f32.mxu0 %vm3840_vm0, %v3841_v4 }
 0x3c1   :  { %3407 = vmatprep.subr.bf16.mxu0 %v3839_v0  ;;  %3430 = vmatpush3.bf16.msra.mxu1 %v3913_v12 }
 0x3c2   :  { %3431 = vmatprep.subr.bf16.mxu1 %v3839_v0  ;;  %2719 = vmatprep.mubr.msk.f32.mxu1 %vm3840_vm0, %v3841_v4 }
 0x3c4   :  { %3409 = vmatpush3.bf16.msra.mxu0 %v4065_v55 }
 0x3c5   :  { %3410 = vmatprep.subr.bf16.mxu0 %v3839_v0  ;;  %3433 = vmatpush3.bf16.msra.mxu1 %v3932_v18 }
 0x3c6   :  { %3434 = vmatprep.subr.bf16.mxu1 %v3839_v0 }
 0x3c8   :  { %3412 = vmatpush3.bf16.msra.mxu0 %v4079_v58 }
 0x3c9   :  { %3413 = vmatprep.subr.bf16.mxu0 %v3839_v0  ;;  %3436 = vmatpush3.bf16.msra.mxu1 %v3952_v24 }
 0x3ca   :  { %3437 = vmatprep.subr.bf16.mxu1 %v3839_v0 }
 0x3cc   :  { %3415 = vmatpush3.bf16.msra.mxu0 %v4101_v61 }
 0x3cd   :  { %3416 = vmatprep.subr.bf16.mxu0 %v3839_v0  ;;  %3439 = vmatpush3.bf16.msra.mxu1 %v3972_v30 }
 0x3ce   :  { %3440 = vmatprep.subr.bf16.mxu1 %v3839_v0 }
 0x3d0   :  { %3418 = vmatpush3.bf16.msra.mxu0 %v4111_v1 }
 0x3d1   :  { %3419 = vmatprep.subr.bf16.mxu0 %v3839_v0  ;;  %3442 = vmatpush3.bf16.msra.mxu1 %v3992_v36 }
 0x3d2   :  { %3443 = vmatprep.subr.bf16.mxu1 %v3839_v0 }
 0x3d4   :  { %3421 = vmatpush3.bf16.msra.mxu0 %v4121_v6 }
 0x3d5   :  { %3422 = vmatprep.subr.bf16.mxu0 %v3839_v0  ;;  %3445 = vmatpush3.bf16.msra.mxu1 %v4012_v42 }
 0x3d6   :  { %3446 = vmatprep.subr.bf16.mxu1 %v3839_v0 }
 0x3d8   :  { %3424 = vmatpush3.bf16.msra.mxu0 %v4131_v10 }
 0x3d9   :  { %3425 = vmatprep.subr.bf16.mxu0 %v3839_v0  ;;  %3448 = vmatpush3.bf16.msra.mxu1 %v4026_v46 }
 0x3da   :  { %3449 = vmatprep.subr.bf16.mxu1 %v3839_v0 }
 0x3dc   :  { %3427 = vmatpush3.bf16.msra.mxu0 %v4141_v14 }
 0x3dd   :  { %3452 = vmatprep.subr.bf16.mxu0 %v3839_v0  ;;  %3451 = vmatpush3.bf16.msra.mxu1 %v4037_v49 }
 0x3de   :  { %3476 = vmatprep.subr.bf16.mxu1 %v3839_v0 }
 0x492   :  { %v608_v38 = vpop.f32.mrb[6].mxu0  ;;  %v685_v40 = vpop.f32.mrb[6].mxu1 }
 0x493   :  { %v689_v41 = vadd.f32 %v1947_v37, %v685_v40  ;;  %v2616_v43 = vpop.f32.mrb[7].mxu0  ;;  %v2651_v44 = vpop.f32.mrb[7].mxu1  ;;  %v612_v56 = vadd.f32 %v1946_v54, %v608_v38  ;;  %v1951_v40 = vld [vmem:[%s4619_s2 + $0x18] sm:$0xff] }
 0x495   :  { %v690_v47 = vmul.f32 0.5, %v689_v41  ;;  %v613_v57 = vmul.f32 0.5, %v612_v56 }
 0x497   :  { %3803 = vtanh.f32 %v690_v47 }
 0x498   :  { %3805 = vtanh.f32 %v613_v57 }
 0x4a1   :  { %v3804_v48 = vpop.eup %3803 }
 0x4a2   :  { %v692_v50 = vmul.f32 0.5, %v3804_v48  ;;  %v3806_v60 = vpop.eup %3805 }
 0x4a3   :  { %v615_v3 = vmul.f32 0.5, %v3806_v60 }
 0x4a4   :  { %v693_v51 = vadd.f32 0.5, %v692_v50 }
 0x4a5   :  { %v616_v8 = vadd.f32 0.5, %v615_v3 }
 0x4a6   :  { %v696_v53 = vmul.f32 %v693_v51, %v4241_v35 }
 0x4a7   :  { %v769_v9 = vsub.f32 1.0, %v616_v8 }
 0x4a8   :  { %2685 = vmatmul.mubr.f32.vlgmr.msra.gmra.mrb[8].mxu0 %v696_v53 }
 0x4a9   :  { %3454 = vmatpush3.bf16.msra.mxu0 %v3889_v5  ;;  %2754 = vmatprep.mubr.msk.f32.mxu0 %vm3840_vm0, %v3841_v4  ;;  %v770_v13 = vmul.f32 %v769_v9, %v4241_v35  ;;  %v1949_v35 = vld [vmem:[%s4618_s0 + $0x18] sm:$0xff] }
 0x4aa   :  { %3455 = vmatprep.subr.bf16.mxu0 %v3839_v0 }
 0x4ad   :  { %3457 = vmatpush3.bf16.msra.mxu0 %v3898_v7 }
 0x4ae   :  { %3458 = vmatprep.subr.bf16.mxu0 %v3839_v0 }
 0x4b1   :  { %3460 = vmatpush3.bf16.msra.mxu0 %v3922_v15 }
 0x4b2   :  { %3461 = vmatprep.subr.bf16.mxu0 %v3839_v0 }
 0x4b5   :  { %3463 = vmatpush3.bf16.msra.mxu0 %v3942_v21 }
 0x4b6   :  { %3464 = vmatprep.subr.bf16.mxu0 %v3839_v0 }
 0x4b9   :  { %3466 = vmatpush3.bf16.msra.mxu0 %v3962_v27 }
 0x4ba   :  { %3467 = vmatprep.subr.bf16.mxu0 %v3839_v0 }
 0x4bd   :  { %3469 = vmatpush3.bf16.msra.mxu0 %v3982_v33 }
 0x4be   :  { %3470 = vmatprep.subr.bf16.mxu0 %v3839_v0 }
 0x4c1   :  { %3472 = vmatpush3.bf16.msra.mxu0 %v4002_v39 }
 0x4c2   :  { %3473 = vmatprep.subr.bf16.mxu0 %v3839_v0 }
 0x4c5   :  { %3475 = vmatpush3.bf16.msra.mxu0 %v4022_v45 }
 0x4c6   :  { %3500 = vmatprep.subr.bf16.mxu0 %v3839_v0 }
 0x57b   :  { %v763_v62 = vpop.f32.mrb[8].mxu0 }
 0x57c   :  { %v767_v63 = vadd.f32 %v1948_v59, %v763_v62  ;;  %v2686_v2 = vpop.f32.mrb[9].mxu0  ;;  %v1953_v59 = vld [vmem:[%s4617_s1 + $0x20] sm:$0xff] }
 0x57e   :  { %3807 = vtanh.f32 %v767_v63 }
 0x588   :  { %v3808_v11 = vpop.eup %3807 }
 0x589   :  { %v771_v16 = vmul.f32 %v3808_v11, %v616_v8 }
 0x58b   :  { %v4310_v17 = vadd.f32 %v771_v16, %v770_v13 }
 0x58d   :  { %2720 = vmatmul.mubr.f32.vlgmr.msra.gmra.mrb[8].mxu1 %v4310_v17  ;;  %2755 = vmatmul.mubr.f32.vlgmr.msra.gmra.mrb[10].mxu0 %v4310_v17 }
 0x58e   :  { %3478 = vmatpush3.bf16.msra.mxu1 %v4052_v52  ;;  %2789 = vmatprep.mubr.msk.f32.mxu1 %vm3840_vm0, %v3841_v4 }
 0x58f   :  { %3479 = vmatprep.subr.bf16.mxu1 %v3839_v0  ;;  %3502 = vmatpush3.bf16.msra.mxu0 %v3913_v12 }
 0x590   :  { %3503 = vmatprep.subr.bf16.mxu0 %v3839_v0  ;;  %2824 = vmatprep.mubr.msk.f32.mxu0 %vm3840_vm0, %v3841_v4 }
 0x592   :  { %3481 = vmatpush3.bf16.msra.mxu1 %v4065_v55 }
 0x593   :  { %3482 = vmatprep.subr.bf16.mxu1 %v3839_v0  ;;  %3505 = vmatpush3.bf16.msra.mxu0 %v3932_v18 }
 0x594   :  { %3506 = vmatprep.subr.bf16.mxu0 %v3839_v0 }
 0x596   :  { %3484 = vmatpush3.bf16.msra.mxu1 %v4079_v58 }
 0x597   :  { %3485 = vmatprep.subr.bf16.mxu1 %v3839_v0  ;;  %3508 = vmatpush3.bf16.msra.mxu0 %v3952_v24 }
 0x598   :  { %3509 = vmatprep.subr.bf16.mxu0 %v3839_v0 }
 0x59a   :  { %3487 = vmatpush3.bf16.msra.mxu1 %v4101_v61 }
 0x59b   :  { %3488 = vmatprep.subr.bf16.mxu1 %v3839_v0  ;;  %3511 = vmatpush3.bf16.msra.mxu0 %v3972_v30 }
 0x59c   :  { %3512 = vmatprep.subr.bf16.mxu0 %v3839_v0 }
 0x59e   :  { %3490 = vmatpush3.bf16.msra.mxu1 %v4111_v1 }
 0x59f   :  { %3491 = vmatprep.subr.bf16.mxu1 %v3839_v0  ;;  %3514 = vmatpush3.bf16.msra.mxu0 %v3992_v36 }
 0x5a0   :  { %3515 = vmatprep.subr.bf16.mxu0 %v3839_v0 }
 0x5a2   :  { %3493 = vmatpush3.bf16.msra.mxu1 %v4121_v6 }
 0x5a3   :  { %3494 = vmatprep.subr.bf16.mxu1 %v3839_v0  ;;  %3517 = vmatpush3.bf16.msra.mxu0 %v4012_v42 }
 0x5a4   :  { %3518 = vmatprep.subr.bf16.mxu0 %v3839_v0 }
 0x5a6   :  { %3496 = vmatpush3.bf16.msra.mxu1 %v4131_v10 }
 0x5a7   :  { %3497 = vmatprep.subr.bf16.mxu1 %v3839_v0  ;;  %3520 = vmatpush3.bf16.msra.mxu0 %v4026_v46 }
 0x5a8   :  { %3521 = vmatprep.subr.bf16.mxu0 %v3839_v0 }
 0x5aa   :  { %3499 = vmatpush3.bf16.msra.mxu1 %v4141_v14 }
 0x5ab   :  { %3524 = vmatprep.subr.bf16.mxu1 %v3839_v0  ;;  %3523 = vmatpush3.bf16.msra.mxu0 %v4037_v49 }
 0x5ac   :  { %3548 = vmatprep.subr.bf16.mxu0 %v3839_v0 }
 0x660   :  { %v841_v20 = vpop.f32.mrb[8].mxu1  ;;  %v918_v22 = vpop.f32.mrb[10].mxu0 }
 0x661   :  { %v922_v23 = vadd.f32 %v1950_v19, %v918_v22  ;;  %v2721_v25 = vpop.f32.mrb[9].mxu1  ;;  %v2756_v26 = vpop.f32.mrb[11].mxu0  ;;  %v845_v37 = vadd.f32 %v1949_v35, %v841_v20  ;;  %v1954_v22 = vld [vmem:[%s4619_s2 + $0x20] sm:$0xff] }
 0x663   :  { %v923_v28 = vmul.f32 0.5, %v922_v23  ;;  %v846_v38 = vmul.f32 0.5, %v845_v37 }
 0x665   :  { %3809 = vtanh.f32 %v923_v28 }
 0x666   :  { %3811 = vtanh.f32 %v846_v38 }
 0x66f   :  { %v3810_v29 = vpop.eup %3809 }
 0x670   :  { %v925_v31 = vmul.f32 0.5, %v3810_v29  ;;  %v3812_v41 = vpop.eup %3811 }
 0x671   :  { %v848_v48 = vmul.f32 0.5, %v3812_v41 }
 0x672   :  { %v926_v32 = vadd.f32 0.5, %v925_v31 }
 0x673   :  { %v849_v50 = vadd.f32 0.5, %v848_v48 }
 0x674   :  { %v929_v34 = vmul.f32 %v926_v32, %v4310_v17 }
 0x675   :  { %v1002_v51 = vsub.f32 1.0, %v849_v50 }
 0x676   :  { %2790 = vmatmul.mubr.f32.vlgmr.msra.gmra.mrb[10].mxu1 %v929_v34 }
 0x677   :  { %3526 = vmatpush3.bf16.msra.mxu1 %v3889_v5  ;;  %2859 = vmatprep.mubr.msk.f32.mxu1 %vm3840_vm0, %v3841_v4  ;;  %v1003_v54 = vmul.f32 %v1002_v51, %v4310_v17  ;;  %v1952_v17 = vld [vmem:[%s4618_s0 + $0x20] sm:$0xff] }
 0x678   :  { %3527 = vmatprep.subr.bf16.mxu1 %v3839_v0 }
 0x67b   :  { %3529 = vmatpush3.bf16.msra.mxu1 %v3898_v7 }
 0x67c   :  { %3530 = vmatprep.subr.bf16.mxu1 %v3839_v0 }
 0x67f   :  { %3532 = vmatpush3.bf16.msra.mxu1 %v3922_v15 }
 0x680   :  { %3533 = vmatprep.subr.bf16.mxu1 %v3839_v0 }
 0x683   :  { %3535 = vmatpush3.bf16.msra.mxu1 %v3942_v21 }
 0x684   :  { %3536 = vmatprep.subr.bf16.mxu1 %v3839_v0 }
 0x687   :  { %3538 = vmatpush3.bf16.msra.mxu1 %v3962_v27 }
 0x688   :  { %3539 = vmatprep.subr.bf16.mxu1 %v3839_v0 }
 0x68b   :  { %3541 = vmatpush3.bf16.msra.mxu1 %v3982_v33 }
 0x68c   :  { %3542 = vmatprep.subr.bf16.mxu1 %v3839_v0 }
 0x68f   :  { %3544 = vmatpush3.bf16.msra.mxu1 %v4002_v39 }
 0x690   :  { %3545 = vmatprep.subr.bf16.mxu1 %v3839_v0 }
 0x693   :  { %3547 = vmatpush3.bf16.msra.mxu1 %v4022_v45 }
 0x694   :  { %3572 = vmatprep.subr.bf16.mxu1 %v3839_v0 }
 0x749   :  { %v996_v43 = vpop.f32.mrb[10].mxu1 }
 0x74a   :  { %v1000_v44 = vadd.f32 %v1951_v40, %v996_v43  ;;  %v2791_v47 = vpop.f32.mrb[11].mxu1  ;;  %v1956_v40 = vld [vmem:[%s4617_s1 + $0x28] sm:$0xff] }
 0x74c   :  { %3813 = vtanh.f32 %v1000_v44 }
 0x756   :  { %v3814_v53 = vpop.eup %3813 }
 0x757   :  { %v1004_v56 = vmul.f32 %v3814_v53, %v849_v50 }
 0x759   :  { %v4379_v57 = vadd.f32 %v1004_v56, %v1003_v54 }
 0x75b   :  { %2825 = vmatmul.mubr.f32.vlgmr.msra.gmra.mrb[12].mxu0 %v4379_v57  ;;  %2860 = vmatmul.mubr.f32.vlgmr.msra.gmra.mrb[12].mxu1 %v4379_v57 }
 0x75c   :  { %3550 = vmatpush3.bf16.msra.mxu0 %v4052_v52  ;;  %2894 = vmatprep.mubr.msk.f32.mxu0 %vm3840_vm0, %v3841_v4 }
 0x75d   :  { %3551 = vmatprep.subr.bf16.mxu0 %v3839_v0  ;;  %3574 = vmatpush3.bf16.msra.mxu1 %v3913_v12 }
 0x75e   :  { %3575 = vmatprep.subr.bf16.mxu1 %v3839_v0  ;;  %2929 = vmatprep.mubr.msk.f32.mxu1 %vm3840_vm0, %v3841_v4 }
 0x760   :  { %3553 = vmatpush3.bf16.msra.mxu0 %v4065_v55 }
 0x761   :  { %3554 = vmatprep.subr.bf16.mxu0 %v3839_v0  ;;  %3577 = vmatpush3.bf16.msra.mxu1 %v3932_v18 }
 0x762   :  { %3578 = vmatprep.subr.bf16.mxu1 %v3839_v0 }
 0x764   :  { %3556 = vmatpush3.bf16.msra.mxu0 %v4079_v58 }
 0x765   :  { %3557 = vmatprep.subr.bf16.mxu0 %v3839_v0  ;;  %3580 = vmatpush3.bf16.msra.mxu1 %v3952_v24 }
 0x766   :  { %3581 = vmatprep.subr.bf16.mxu1 %v3839_v0 }
 0x768   :  { %3559 = vmatpush3.bf16.msra.mxu0 %v4101_v61 }
 0x769   :  { %3560 = vmatprep.subr.bf16.mxu0 %v3839_v0  ;;  %3583 = vmatpush3.bf16.msra.mxu1 %v3972_v30 }
 0x76a   :  { %3584 = vmatprep.subr.bf16.mxu1 %v3839_v0 }
 0x76c   :  { %3562 = vmatpush3.bf16.msra.mxu0 %v4111_v1 }
 0x76d   :  { %3563 = vmatprep.subr.bf16.mxu0 %v3839_v0  ;;  %3586 = vmatpush3.bf16.msra.mxu1 %v3992_v36 }
 0x76e   :  { %3587 = vmatprep.subr.bf16.mxu1 %v3839_v0 }
 0x770   :  { %3565 = vmatpush3.bf16.msra.mxu0 %v4121_v6 }
 0x771   :  { %3566 = vmatprep.subr.bf16.mxu0 %v3839_v0  ;;  %3589 = vmatpush3.bf16.msra.mxu1 %v4012_v42 }
 0x772   :  { %3590 = vmatprep.subr.bf16.mxu1 %v3839_v0 }
 0x774   :  { %3568 = vmatpush3.bf16.msra.mxu0 %v4131_v10 }
 0x775   :  { %3569 = vmatprep.subr.bf16.mxu0 %v3839_v0  ;;  %3592 = vmatpush3.bf16.msra.mxu1 %v4026_v46 }
 0x776   :  { %3593 = vmatprep.subr.bf16.mxu1 %v3839_v0 }
 0x778   :  { %3571 = vmatpush3.bf16.msra.mxu0 %v4141_v14 }
 0x779   :  { %3596 = vmatprep.subr.bf16.mxu0 %v3839_v0  ;;  %3595 = vmatpush3.bf16.msra.mxu1 %v4037_v49 }
 0x77a   :  { %3620 = vmatprep.subr.bf16.mxu1 %v3839_v0 }
 0x82e   :  { %v1074_v60 = vpop.f32.mrb[12].mxu0  ;;  %v1151_v62 = vpop.f32.mrb[12].mxu1 }
 0x82f   :  { %v1155_v63 = vadd.f32 %v1953_v59, %v1151_v62  ;;  %v2826_v2 = vpop.f32.mrb[13].mxu0  ;;  %v2861_v3 = vpop.f32.mrb[13].mxu1  ;;  %v1078_v19 = vadd.f32 %v1952_v17, %v1074_v60  ;;  %v1957_v62 = vld [vmem:[%s4619_s2 + $0x28] sm:$0xff] }
 0x831   :  { %v1156_v8 = vmul.f32 0.5, %v1155_v63  ;;  %v1079_v20 = vmul.f32 0.5, %v1078_v19 }
 0x833   :  { %3815 = vtanh.f32 %v1156_v8 }
 0x834   :  { %3817 = vtanh.f32 %v1079_v20 }
 0x83d   :  { %v3816_v9 = vpop.eup %3815 }
 0x83e   :  { %v1158_v11 = vmul.f32 0.5, %v3816_v9  ;;  %v3818_v23 = vpop.eup %3817 }
 0x83f   :  { %v1081_v29 = vmul.f32 0.5, %v3818_v23 }
 0x840   :  { %v1159_v13 = vadd.f32 0.5, %v1158_v11 }
 0x841   :  { %v1082_v31 = vadd.f32 0.5, %v1081_v29 }
 0x842   :  { %v1162_v16 = vmul.f32 %v1159_v13, %v4379_v57 }
 0x843   :  { %v1235_v32 = vsub.f32 1.0, %v1082_v31 }
 0x844   :  { %2895 = vmatmul.mubr.f32.vlgmr.msra.gmra.mrb[14].mxu0 %v1162_v16 }
 0x845   :  { %3598 = vmatpush3.bf16.msra.mxu0 %v3889_v5  ;;  %2964 = vmatprep.mubr.msk.f32.mxu0 %vm3840_vm0, %v3841_v4  ;;  %v1236_v35 = vmul.f32 %v1235_v32, %v4379_v57  ;;  %v1955_v57 = vld [vmem:[%s4618_s0 + $0x28] sm:$0xff] }
 0x846   :  { %3599 = vmatprep.subr.bf16.mxu0 %v3839_v0 }
 0x849   :  { %3601 = vmatpush3.bf16.msra.mxu0 %v3898_v7 }
 0x84a   :  { %3602 = vmatprep.subr.bf16.mxu0 %v3839_v0 }
 0x84d   :  { %3604 = vmatpush3.bf16.msra.mxu0 %v3922_v15 }
 0x84e   :  { %3605 = vmatprep.subr.bf16.mxu0 %v3839_v0 }
 0x851   :  { %3607 = vmatpush3.bf16.msra.mxu0 %v3942_v21 }
 0x852   :  { %3608 = vmatprep.subr.bf16.mxu0 %v3839_v0 }
 0x855   :  { %3610 = vmatpush3.bf16.msra.mxu0 %v3962_v27 }
 0x856   :  { %3611 = vmatprep.subr.bf16.mxu0 %v3839_v0 }
 0x859   :  { %3613 = vmatpush3.bf16.msra.mxu0 %v3982_v33 }
 0x85a   :  { %3614 = vmatprep.subr.bf16.mxu0 %v3839_v0 }
 0x85d   :  { %3616 = vmatpush3.bf16.msra.mxu0 %v4002_v39 }
 0x85e   :  { %3617 = vmatprep.subr.bf16.mxu0 %v3839_v0 }
 0x861   :  { %3619 = vmatpush3.bf16.msra.mxu0 %v4022_v45 }
 0x862   :  { %3644 = vmatprep.subr.bf16.mxu0 %v3839_v0 }
 0x917   :  { %v1229_v25 = vpop.f32.mrb[14].mxu0 }
 0x918   :  { %v1233_v26 = vadd.f32 %v1954_v22, %v1229_v25  ;;  %v2896_v28 = vpop.f32.mrb[15].mxu0 }
 0x91a   :  { %3819 = vtanh.f32 %v1233_v26 }
 0x924   :  { %v3820_v34 = vpop.eup %3819 }
 0x925   :  { %v1237_v37 = vmul.f32 %v3820_v34, %v1082_v31 }
 0x927   :  { %v4448_v38 = vadd.f32 %v1237_v37, %v1236_v35 }
 0x929   :  { %2930 = vmatmul.mubr.f32.vlgmr.msra.gmra.mrb[14].mxu1 %v4448_v38  ;;  %2965 = vmatmul.mubr.f32.vlgmr.msra.gmra.mrb[16].mxu0 %v4448_v38 }
 0x92a   :  { %3622 = vmatpush3.bf16.msra.mxu1 %v4052_v52  ;;  %2999 = vmatprep.mubr.msk.f32.mxu1 %vm3840_vm0, %v3841_v4 }
 0x92b   :  { %3623 = vmatprep.subr.bf16.mxu1 %v3839_v0  ;;  %3646 = vmatpush3.bf16.msra.mxu0 %v3913_v12 }
 0x92c   :  { %3647 = vmatprep.subr.bf16.mxu0 %v3839_v0  ;;  %3034 = vmatprep.mubr.msk.f32.mxu0 %vm3840_vm0, %v3841_v4 }
 0x92e   :  { %3625 = vmatpush3.bf16.msra.mxu1 %v4065_v55 }
 0x92f   :  { %3626 = vmatprep.subr.bf16.mxu1 %v3839_v0  ;;  %3649 = vmatpush3.bf16.msra.mxu0 %v3932_v18 }
 0x930   :  { %3650 = vmatprep.subr.bf16.mxu0 %v3839_v0 }
 0x932   :  { %3628 = vmatpush3.bf16.msra.mxu1 %v4079_v58 }
 0x933   :  { %3629 = vmatprep.subr.bf16.mxu1 %v3839_v0  ;;  %3652 = vmatpush3.bf16.msra.mxu0 %v3952_v24 }
 0x934   :  { %3653 = vmatprep.subr.bf16.mxu0 %v3839_v0 }
 0x936   :  { %3631 = vmatpush3.bf16.msra.mxu1 %v4101_v61 }
 0x937   :  { %3632 = vmatprep.subr.bf16.mxu1 %v3839_v0  ;;  %3655 = vmatpush3.bf16.msra.mxu0 %v3972_v30 }
 0x938   :  { %3656 = vmatprep.subr.bf16.mxu0 %v3839_v0 }
 0x93a   :  { %3634 = vmatpush3.bf16.msra.mxu1 %v4111_v1 }
 0x93b   :  { %3635 = vmatprep.subr.bf16.mxu1 %v3839_v0  ;;  %3658 = vmatpush3.bf16.msra.mxu0 %v3992_v36 }
 0x93c   :  { %3659 = vmatprep.subr.bf16.mxu0 %v3839_v0 }
 0x93e   :  { %3637 = vmatpush3.bf16.msra.mxu1 %v4121_v6 }
 0x93f   :  { %3638 = vmatprep.subr.bf16.mxu1 %v3839_v0  ;;  %3661 = vmatpush3.bf16.msra.mxu0 %v4012_v42 }
 0x940   :  { %3662 = vmatprep.subr.bf16.mxu0 %v3839_v0 }
 0x942   :  { %3640 = vmatpush3.bf16.msra.mxu1 %v4131_v10 }
 0x943   :  { %3641 = vmatprep.subr.bf16.mxu1 %v3839_v0  ;;  %3664 = vmatpush3.bf16.msra.mxu0 %v4026_v46 }
 0x944   :  { %3665 = vmatprep.subr.bf16.mxu0 %v3839_v0 }
 0x946   :  { %3643 = vmatpush3.bf16.msra.mxu1 %v4141_v14 }
 0x947   :  { %3668 = vmatprep.subr.bf16.mxu1 %v3839_v0  ;;  %3667 = vmatpush3.bf16.msra.mxu0 %v4037_v49 }
 0x948   :  { %3692 = vmatprep.subr.bf16.mxu0 %v3839_v0 }
 0x9fc   :  { %v1307_v41 = vpop.f32.mrb[14].mxu1  ;;  %v1384_v43 = vpop.f32.mrb[16].mxu0 }
 0x9fd   :  { %v1388_v44 = vadd.f32 %v1956_v40, %v1384_v43  ;;  %v2931_v47 = vpop.f32.mrb[15].mxu1  ;;  %v2966_v48 = vpop.f32.mrb[17].mxu0  ;;  %v1311_v59 = vadd.f32 %v1955_v57, %v1307_v41  ;;  %v1963_v43 = vld [vmem:[%s4619_s2 + $0x38] sm:$0xff] }
 0x9ff   :  { %v1389_v50 = vmul.f32 0.5, %v1388_v44  ;;  %v1312_v60 = vmul.f32 0.5, %v1311_v59 }
 0xa01   :  { %3821 = vtanh.f32 %v1389_v50 }
 0xa02   :  { %3823 = vtanh.f32 %v1312_v60 }
 0xa0b   :  { %v3822_v51 = vpop.eup %3821 }
 0xa0c   :  { %v1391_v53 = vmul.f32 0.5, %v3822_v51  ;;  %v3824_v63 = vpop.eup %3823 }
 0xa0d   :  { %v1314_v9 = vmul.f32 0.5, %v3824_v63 }
 0xa0e   :  { %v1392_v54 = vadd.f32 0.5, %v1391_v53 }
 0xa0f   :  { %v1315_v11 = vadd.f32 0.5, %v1314_v9 }
 0xa10   :  { %v1395_v56 = vmul.f32 %v1392_v54, %v4448_v38 }
 0xa11   :  { %v1468_v13 = vsub.f32 1.0, %v1315_v11 }
 0xa12   :  { %3000 = vmatmul.mubr.f32.vlgmr.msra.gmra.mrb[16].mxu1 %v1395_v56 }
 0xa13   :  { %3670 = vmatpush3.bf16.msra.mxu1 %v3889_v5  ;;  %3069 = vmatprep.mubr.msk.f32.mxu1 %vm3840_vm0, %v3841_v4  ;;  %v1469_v17 = vmul.f32 %v1468_v13, %v4448_v38 }
 0xa14   :  { %3671 = vmatprep.subr.bf16.mxu1 %v3839_v0 }
 0xa17   :  { %3673 = vmatpush3.bf16.msra.mxu1 %v3898_v7 }
 0xa18   :  { %3674 = vmatprep.subr.bf16.mxu1 %v3839_v0 }
 0xa1b   :  { %3676 = vmatpush3.bf16.msra.mxu1 %v3922_v15 }
 0xa1c   :  { %3677 = vmatprep.subr.bf16.mxu1 %v3839_v0 }
 0xa1f   :  { %3679 = vmatpush3.bf16.msra.mxu1 %v3942_v21 }
 0xa20   :  { %3680 = vmatprep.subr.bf16.mxu1 %v3839_v0 }
 0xa23   :  { %3682 = vmatpush3.bf16.msra.mxu1 %v3962_v27 }
 0xa24   :  { %3683 = vmatprep.subr.bf16.mxu1 %v3839_v0 }
 0xa27   :  { %3685 = vmatpush3.bf16.msra.mxu1 %v3982_v33 }
 0xa28   :  { %3686 = vmatprep.subr.bf16.mxu1 %v3839_v0 }
 0xa2b   :  { %3688 = vmatpush3.bf16.msra.mxu1 %v4002_v39 }
 0xa2c   :  { %3689 = vmatprep.subr.bf16.mxu1 %v3839_v0 }
 0xa2f   :  { %3691 = vmatpush3.bf16.msra.mxu1 %v4022_v45 }
 0xa30   :  { %3716 = vmatprep.subr.bf16.mxu1 %v3839_v0 }
 0xae5   :  { %v1462_v2 = vpop.f32.mrb[16].mxu1 }
 0xae6   :  { %v1466_v3 = vadd.f32 %v1957_v62, %v1462_v2  ;;  %v3001_v8 = vpop.f32.mrb[17].mxu1 }
 0xae8   :  { %3825 = vtanh.f32 %v1466_v3 }
 0xaf2   :  { %v3826_v16 = vpop.eup %3825 }
 0xaf3   :  { %v1470_v19 = vmul.f32 %v3826_v16, %v1315_v11 }
 0xaf5   :  { %v4517_v20 = vadd.f32 %v1470_v19, %v1469_v17 }
 0xaf7   :  { %3035 = vmatmul.mubr.f32.vlgmr.msra.gmra.mrb[18].mxu0 %v4517_v20  ;;  %3070 = vmatmul.mubr.f32.vlgmr.msra.gmra.mrb[18].mxu1 %v4517_v20 }
 0xaf8   :  { %3694 = vmatpush3.bf16.msra.mxu0 %v4052_v52  ;;  %3104 = vmatprep.mubr.msk.f32.mxu0 %vm3840_vm0, %v3841_v4 }
 0xaf9   :  { %3695 = vmatprep.subr.bf16.mxu0 %v3839_v0  ;;  %3718 = vmatpush3.bf16.msra.mxu1 %v3913_v12  ;;  %v1959_v12 = vld [vmem:[%s4617_s1 + $0x30] sm:$0xff] }
 0xafa   :  { %3719 = vmatprep.subr.bf16.mxu1 %v3839_v0  ;;  %3139 = vmatprep.mubr.msk.f32.mxu1 %vm3840_vm0, %v3841_v4 }
 0xafc   :  { %3697 = vmatpush3.bf16.msra.mxu0 %v4065_v55 }
 0xafd   :  { %3698 = vmatprep.subr.bf16.mxu0 %v3839_v0  ;;  %3721 = vmatpush3.bf16.msra.mxu1 %v3932_v18 }
 0xafe   :  { %3722 = vmatprep.subr.bf16.mxu1 %v3839_v0 }
 0xb00   :  { %3700 = vmatpush3.bf16.msra.mxu0 %v4079_v58 }
 0xb01   :  { %3701 = vmatprep.subr.bf16.mxu0 %v3839_v0  ;;  %3724 = vmatpush3.bf16.msra.mxu1 %v3952_v24 }
 0xb02   :  { %3725 = vmatprep.subr.bf16.mxu1 %v3839_v0 }
 0xb04   :  { %3703 = vmatpush3.bf16.msra.mxu0 %v4101_v61 }
 0xb05   :  { %3704 = vmatprep.subr.bf16.mxu0 %v3839_v0  ;;  %3727 = vmatpush3.bf16.msra.mxu1 %v3972_v30 }
 0xb06   :  { %3728 = vmatprep.subr.bf16.mxu1 %v3839_v0 }
 0xb08   :  { %3706 = vmatpush3.bf16.msra.mxu0 %v4111_v1 }
 0xb09   :  { %3707 = vmatprep.subr.bf16.mxu0 %v3839_v0  ;;  %3730 = vmatpush3.bf16.msra.mxu1 %v3992_v36 }
 0xb0a   :  { %3731 = vmatprep.subr.bf16.mxu1 %v3839_v0 }
 0xb0c   :  { %3709 = vmatpush3.bf16.msra.mxu0 %v4121_v6 }
 0xb0d   :  { %3710 = vmatprep.subr.bf16.mxu0 %v3839_v0  ;;  %3733 = vmatpush3.bf16.msra.mxu1 %v4012_v42 }
 0xb0e   :  { %3734 = vmatprep.subr.bf16.mxu1 %v3839_v0 }
 0xb10   :  { %3712 = vmatpush3.bf16.msra.mxu0 %v4131_v10 }
 0xb11   :  { %3713 = vmatprep.subr.bf16.mxu0 %v3839_v0  ;;  %3736 = vmatpush3.bf16.msra.mxu1 %v4026_v46 }
 0xb12   :  { %3737 = vmatprep.subr.bf16.mxu1 %v3839_v0 }
 0xb14   :  { %3715 = vmatpush3.bf16.msra.mxu0 %v4141_v14 }
 0xb15   :  { %3740 = vmatprep.subr.bf16.mxu0 %v3839_v0  ;;  %3739 = vmatpush3.bf16.msra.mxu1 %v4037_v49 }
 0xb16   :  { %3764 = vmatprep.subr.bf16.mxu1 %v3839_v0 }
 0xbca   :  { %v1540_v18 = vpop.f32.mrb[18].mxu0  ;;  %v1617_v24 = vpop.f32.mrb[18].mxu1 }
 0xbcb   :  { %v1621_v30 = vadd.f32 %v1959_v12, %v1617_v24  ;;  %v3036_v36 = vpop.f32.mrb[19].mxu0  ;;  %v3071_v42 = vpop.f32.mrb[19].mxu1 }
 0xbcd   :  { %v1622_v46 = vmul.f32 0.5, %v1621_v30 }
 0xbcf   :  { %3827 = vtanh.f32 %v1622_v46 }
 0xbd9   :  { %v3828_v22 = vpop.eup %3827 }
 0xbda   :  { %v1624_v23 = vmul.f32 0.5, %v3828_v22 }
 0xbdc   :  { %v1625_v25 = vadd.f32 0.5, %v1624_v23 }
 0xbde   :  { %v1628_v26 = vmul.f32 %v1625_v25, %v4517_v20 }
 0xbe0   :  { %3105 = vmatmul.mubr.f32.vlgmr.msra.gmra.mrb[20].mxu0 %v1628_v26 }
 0xbe1   :  { %3742 = vmatpush3.bf16.msra.mxu0 %v3889_v5  ;;  %3174 = vmatprep.mubr.msk.f32.mxu0 %vm3840_vm0, %v3841_v4  ;;  %v1958_v5 = vld [vmem:[%s4618_s0 + $0x30] sm:$0xff] }
 0xbe2   :  { %3743 = vmatprep.subr.bf16.mxu0 %v3839_v0 }
 0xbe5   :  { %3745 = vmatpush3.bf16.msra.mxu0 %v3898_v7  ;;  %v1544_v7 = vadd.f32 %v1958_v5, %v1540_v18 }
 0xbe6   :  { %3746 = vmatprep.subr.bf16.mxu0 %v3839_v0 }
 0xbe9   :  { %3748 = vmatpush3.bf16.msra.mxu0 %v3922_v15  ;;  %v1545_v15 = vmul.f32 0.5, %v1544_v7 }
 0xbea   :  { %3749 = vmatprep.subr.bf16.mxu0 %v3839_v0 }
 0xbeb   :  { %3829 = vtanh.f32 %v1545_v15 }
 0xbed   :  { %3751 = vmatpush3.bf16.msra.mxu0 %v3942_v21  ;;  %v1960_v21 = vld [vmem:[%s4619_s2 + $0x30] sm:$0xff] }
 0xbee   :  { %3752 = vmatprep.subr.bf16.mxu0 %v3839_v0 }
 0xbf1   :  { %3754 = vmatpush3.bf16.msra.mxu0 %v3962_v27 }
 0xbf2   :  { %3755 = vmatprep.subr.bf16.mxu0 %v3839_v0 }
 0xbf5   :  { %3757 = vmatpush3.bf16.msra.mxu0 %v3982_v33  ;;  %v3830_v27 = vpop.eup %3829 }
 0xbf6   :  { %3758 = vmatprep.subr.bf16.mxu0 %v3839_v0 }
 0xbf9   :  { %3760 = vmatpush3.bf16.msra.mxu0 %v4002_v39  ;;  %v1547_v39 = vmul.f32 0.5, %v3830_v27 }
 0xbfa   :  { %3761 = vmatprep.subr.bf16.mxu0 %v3839_v0 }
 0xbfb   :  { %v1548_v29 = vadd.f32 0.5, %v1547_v39 }
 0xbfd   :  { %3763 = vmatpush3.bf16.msra.mxu0 %v4022_v45  ;;  %v1701_v31 = vsub.f32 1.0, %v1548_v29 }
 0xbff   :  { %v1702_v32 = vmul.f32 %v1701_v31, %v4517_v20 }
 0xcb3   :  { %v1695_v33 = vpop.f32.mrb[20].mxu0 }
 0xcb4   :  { %v1699_v49 = vadd.f32 %v1960_v21, %v1695_v33  ;;  %v3106_v28 = vpop.f32.mrb[21].mxu0 }
 0xcb6   :  { %3831 = vtanh.f32 %v1699_v49 }
 0xcc0   :  { %v3832_v45 = vpop.eup %3831 }
 0xcc1   :  { %v1703_v34 = vmul.f32 %v3832_v45, %v1548_v29 }
 0xcc3   :  { %v1704_v35 = vadd.f32 %v1703_v34, %v1702_v32 }
 0xcc5   :  { %3140 = vmatmul.mubr.f32.vlgmr.msra.gmra.mrb[20].mxu1 %v1704_v35  ;;  %3175 = vmatmul.mubr.f32.vlgmr.msra.gmra.mrb[22].mxu0 %v1704_v35 }
 0xcc6   :  { %3766 = vmatpush3.bf16.msra.mxu1 %v4052_v52  ;;  %3209 = vmatprep.mubr.msk.f32.mxu1 %vm3840_vm0, %v3841_v4  ;;  %v1962_v4 = vld [vmem:[%s4617_s1 + $0x38] sm:$0xff] }
 0xcc7   :  { %3767 = vmatprep.subr.bf16.mxu1 %v3839_v0 }
 0xcca   :  { %3769 = vmatpush3.bf16.msra.mxu1 %v4065_v55 }
 0xccb   :  { %3770 = vmatprep.subr.bf16.mxu1 %v3839_v0 }
 0xcce   :  { %3772 = vmatpush3.bf16.msra.mxu1 %v4079_v58 }
 0xccf   :  { %3773 = vmatprep.subr.bf16.mxu1 %v3839_v0 }
 0xcd2   :  { %3775 = vmatpush3.bf16.msra.mxu1 %v4101_v61 }
 0xcd3   :  { %3776 = vmatprep.subr.bf16.mxu1 %v3839_v0 }
 0xcd6   :  { %3778 = vmatpush3.bf16.msra.mxu1 %v4111_v1 }
 0xcd7   :  { %3779 = vmatprep.subr.bf16.mxu1 %v3839_v0 }
 0xcda   :  { %3781 = vmatpush3.bf16.msra.mxu1 %v4121_v6 }
 0xcdb   :  { %3782 = vmatprep.subr.bf16.mxu1 %v3839_v0 }
 0xcde   :  { %3784 = vmatpush3.bf16.msra.mxu1 %v4131_v10 }
 0xcdf   :  { %3785 = vmatprep.subr.bf16.mxu1 %v3839_v0  ;;  %v1961_v0 = vld [vmem:[%s4618_s0 + $0x38] sm:$0xff] }
 0xce2   :  { %3787 = vmatpush3.bf16.msra.mxu1 %v4141_v14 }
 0xd98   :  { %v1773_v52 = vpop.f32.mrb[20].mxu1  ;;  %v1850_v55 = vpop.f32.mrb[22].mxu0 }
 0xd99   :  { %v1854_v58 = vadd.f32 %v1962_v4, %v1850_v55  ;;  %v3141_v61 = vpop.f32.mrb[21].mxu1  ;;  %v3176_v1 = vpop.f32.mrb[23].mxu0  ;;  %v1777_v10 = vadd.f32 %v1961_v0, %v1773_v52 }
 0xd9b   :  { %v1855_v37 = vmul.f32 0.5, %v1854_v58  ;;  %v1778_v14 = vmul.f32 0.5, %v1777_v10 }
 0xd9d   :  { %3833 = vtanh.f32 %v1855_v37 }
 0xd9e   :  { %3835 = vtanh.f32 %v1778_v14 }
 0xda7   :  { %v3834_v6 = vpop.eup %3833 }
 0xda8   :  { %v1857_v38 = vmul.f32 0.5, %v3834_v6  ;;  %v3836_v44 = vpop.eup %3835 }
 0xda9   :  { %v1780_v51 = vmul.f32 0.5, %v3836_v44 }
 0xdaa   :  { %v1858_v40 = vadd.f32 0.5, %v1857_v38 }
 0xdab   :  { %v1781_v53 = vadd.f32 0.5, %v1780_v51 }
 0xdac   :  { %v1861_v41 = vmul.f32 %v1858_v40, %v1704_v35 }
 0xdad   :  { %v1934_v54 = vsub.f32 1.0, %v1781_v53 }
 0xdae   :  { %3210 = vmatmul.mubr.f32.vlgmr.msra.gmra.mrb[22].mxu1 %v1861_v41 }
 0xdaf   :  { %v1935_v57 = vmul.f32 %v1934_v54, %v1704_v35 }
 0xe81   :  { %v1928_v47 = vpop.f32.mrb[22].mxu1 }
 0xe82   :  { %v1932_v48 = vadd.f32 %v1963_v43, %v1928_v47  ;;  %v3211_v50 = vpop.f32.mrb[23].mxu1 }
 0xe84   :  { %3837 = vtanh.f32 %v1932_v48 }
 0xe8e   :  { %v3838_v56 = vpop.eup %3837 }
 0xe8f   :  { %v1936_v59 = vmul.f32 %v3838_v56, %v1781_v53 }
 0xe91   :  { %v1937_v60 = vadd.f32 %v1936_v59, %v1935_v57 }
 0xe93   :  { %1938 = vst [vmem:[%s4620_s6] sm:$0xff] %v1937_v60 }

</bundles_post_ra>
